<compile_context>
chip_gen: v7x
topology: tpu7x:2x2x1
jax: 0.10.0
libtpu: 0.0.40
codegen_flags: <defaults>
</compile_context>

<pallas_src>
import functools

import jax
import jax.numpy as jnp
from jax.experimental import pallas as pl
from jax.experimental.pallas import tpu as pltpu


# ---------------------------------------------------------------------------
# Fused kernel: Bayesian MLP + softmax(dim=1) + overlap mask + top-k threshold
# ---------------------------------------------------------------------------
def _blayer_fused_kernel(x_ref, w1_ref, b1_ref, w2_ref, b2_ref, sel_ref, *rest,
                         node_num, rank, overlap):
    if overlap:
        phyinv_ref, o_ref = rest          # phyinv_ref holds (1 - phy_graph)
    else:
        (o_ref,) = rest
    N = node_num
    B = x_ref.shape[0]

    # ---- Bayesian MLP: relu(out(relu(hidden(x)))) -------------------------
    h = jnp.dot(x_ref[...], w1_ref[...], preferred_element_type=jnp.float32)
    h = jnp.maximum(h + b1_ref[...], 0.0)                          # relu1

    # Second layer per graph-row group i:  cols[i][b, j] == prob[b, i, j]
    cols = []
    for i in range(N):
        ci = jnp.dot(h, w2_ref[i], preferred_element_type=jnp.float32)
        cols.append(jnp.maximum(ci + b2_ref[i], 0.0))              # relu2, (B, N)

    # ---- softmax over dim=1 (the i axis): elementwise across the list -----
    m = cols[0]
    for i in range(1, N):
        m = jnp.maximum(m, cols[i])
    es = [jnp.exp(c - m) for c in cols]
    denom = es[0]
    for i in range(1, N):
        denom = denom + es[i]
    inv = pl.reciprocal(denom, approx=True)                        # EUP slot
    sm = [e * inv for e in es]

    # ---- optional overlap mask: (1 - phy)[i, :] broadcast over the batch --
    if overlap:
        sm = [sm[i] * phyinv_ref[i] for i in range(N)]             # (1,N)*(B,N)

    # ---- k-th largest along dim=2 + relu(sign(.)), scattered lane-densely -
    col_iota = jax.lax.broadcasted_iota(jnp.int32, (B, N), 1)
    out_full = jnp.zeros((B, N * N), jnp.float32)
    for i in range(N):
        row = sm[i]
        cur = row
        # Iterative first-occurrence removal of the row maximum (matches
        # torch.topk multiplicity semantics; only the k-th *value* matters).
        for _ in range(rank - 1):
            row_max = jnp.max(cur, axis=1, keepdims=True)
            first = jnp.min(jnp.where(cur == row_max, col_iota, N),
                            axis=1, keepdims=True)
            cur = jnp.where(col_iota == first, -jnp.inf, cur)
        kth = jnp.max(cur, axis=1, keepdims=True)                  # topk[:, i, -1]
        # relu(sign(row - kth)) == 1.0 where row > kth else 0.0
        bin_i = jnp.where(row > kth, 1.0, 0.0)
        # MXU scatter: place the (B, N) group at lanes [i*N, (i+1)*N) of the
        # lane-dense (B, N*N) slab (MXU is idle; avoids narrow masked stores).
        out_full = out_full + jnp.dot(bin_i, sel_ref[i],
                                      preferred_element_type=jnp.float32)

    o_ref[...] = out_full.astype(o_ref.dtype)                      # one dense store


# ---------------------------------------------------------------------------
# BLayer forward wrapper
# ---------------------------------------------------------------------------
def blayer_forward(x, params, phy_graph, *, node_num, rank, overlap):
    B, Fin = x.shape
    H = params["w1t"].shape[1]
    Fout = params["w2t"].shape[1]
    N = node_num
    assert Fout == N * N
    assert 1 <= rank <= N

    # Host/XLA-side weight re-layouts (tiny, hoisted out of the kernel):
    #   w2g[i, h, j] = w2t[h, i*N + j],  b2g[i, 0, j] = b2[i*N + j]
    w2g = jnp.transpose(params["w2t"].reshape(H, N, N), (1, 0, 2))   # (N, H, N)
    b2g = params["b2"].reshape(N, 1, N)
    # Selector matrices: sel[i, j, k] = 1 iff k == i*N + j  (lane scatter).
    sel = jnp.eye(N * N, dtype=jnp.float32).reshape(N, N, N * N)

    kern = functools.partial(_blayer_fused_kernel, node_num=N, rank=rank,
                             overlap=overlap)
    in_specs = [
        pl.BlockSpec((B, Fin), lambda i: (0, 0)),
        pl.BlockSpec((Fin, H), lambda i: (0, 0)),
        pl.BlockSpec((1, H), lambda i: (0, 0)),
        pl.BlockSpec((N, H, N), lambda i: (0, 0, 0)),
        pl.BlockSpec((N, 1, N), lambda i: (0, 0, 0)),
        pl.BlockSpec((N, N, N * N), lambda i: (0, 0, 0)),
    ]
    args = [x, params["w1t"], params["b1"].reshape(1, -1), w2g, b2g, sel]
    if overlap:
        # phy_graph is (N, N) and broadcast over the batch, matching
        # torch.stack([1 - phy] * batch, dim=0) in the reference module.
        in_specs.append(pl.BlockSpec((N, 1, N), lambda i: (0, 0, 0)))
        args.append((1.0 - phy_graph).reshape(N, 1, N))

    # Single grid step over the whole batch; for much larger B on v7x a
    # leading "parallel" batch axis could shard across the 2 TensorCores.
    flat = pl.pallas_call(
        kern,
        out_shape=jax.ShapeDtypeStruct((B, N * N), jnp.float32),
        grid=(1,),
        in_specs=in_specs,
        out_specs=pl.BlockSpec((B, N * N), lambda i: (0, 0)),
        compiler_params=pltpu.CompilerParams(
            dimension_semantics=("arbitrary",)),
    )(*args)
    return flat.reshape(B, N, N)


# ---------------------------------------------------------------------------
# Deterministic parameter construction (BayesianLinear reparameterization)
#   w_mu = w_rho = 0  =>  w = softplus(0) * eps,  eps ~ N(0, 0.1)
# ---------------------------------------------------------------------------
def init_bayesian_linear(key, in_features, out_features):
    kw, kb = jax.random.split(key)
    softplus0 = jnp.log(2.0)                       # log(1 + exp(0))
    w_eps = 0.1 * jax.random.normal(kw, (out_features, in_features), jnp.float32)
    b_eps = 0.1 * jax.random.normal(kb, (out_features,), jnp.float32)
    w = 0.0 + softplus0 * w_eps
    b = 0.0 + softplus0 * b_eps
    return w, b
# TODO(synk): log_prior / log_post are side attributes of the PyTorch module
# (Normal log-prob sums over the sampled weights), not part of the forward
# return value; they are not materialized here.


if __name__ == "__main__":
    node_num = 8
    rank = 3
    batch = 2
    input_features = 32
    output_features = node_num * node_num          # 64, as implied by view()

    key = jax.random.PRNGKey(0)
    kx, kphy, k1, k2 = jax.random.split(key, 4)

    x = jax.random.normal(kx, (batch, input_features), jnp.float32)
    phy_graph = (jax.random.uniform(kphy, (node_num, node_num)) > 0.5
                 ).astype(jnp.float32)

    w1, b1 = init_bayesian_linear(k1, input_features, 16)        # hidden layer
    w2, b2 = init_bayesian_linear(k2, 16, output_features)       # out layer
    params = {"w1t": w1.T, "b1": b1, "w2t": w2.T, "b2": b2}

    out = blayer_forward(x, params, phy_graph,
                         node_num=node_num, rank=rank, overlap=True)
    out_no_mask = blayer_forward(x, params, phy_graph,
                                 node_num=node_num, rank=rank, overlap=False)
    jax.block_until_ready((out, out_no_mask))
    assert out.shape == (batch, node_num, node_num)
    assert out_no_mask.shape == (batch, node_num, node_num)
    print("KERNEL_OK")
</pallas_src>

<mosaic_0001>
module attributes {stable_mosaic.version = 11 : i64} {
  func.func @_blayer_fused_kernel(%arg0: i32, %arg1: memref<2x32xf32, #tpu.memory_space<vmem>>, %arg2: memref<32x16xf32, #tpu.memory_space<vmem>>, %arg3: memref<1x16xf32, #tpu.memory_space<vmem>>, %arg4: memref<8x16x8xf32, #tpu.memory_space<vmem>>, %arg5: memref<8x1x8xf32, #tpu.memory_space<vmem>>, %arg6: memref<8x8x64xf32, #tpu.memory_space<vmem>>, %arg7: memref<8x1x8xf32, #tpu.memory_space<vmem>>, %arg8: memref<2x64xf32, #tpu.memory_space<vmem>>) attributes {dimension_semantics = [#tpu.dimension_semantics<arbitrary>], iteration_bounds = array<i64: 1>, scalar_prefetch = 0 : i64, scratch_operands = 0 : i64, tpu.core_type = #tpu.core_type<tc>, window_params = [{pipeline_mode = #tpu.pipeline_mode<synchronous>, transform_indices = @transform_0, window_bounds = array<i64: 2, 32>}, {pipeline_mode = #tpu.pipeline_mode<synchronous>, transform_indices = @transform_1, window_bounds = array<i64: 32, 16>}, {pipeline_mode = #tpu.pipeline_mode<synchronous>, transform_indices = @transform_2, window_bounds = array<i64: 1, 16>}, {pipeline_mode = #tpu.pipeline_mode<synchronous>, transform_indices = @transform_3, window_bounds = array<i64: 8, 16, 8>}, {pipeline_mode = #tpu.pipeline_mode<synchronous>, transform_indices = @transform_4, window_bounds = array<i64: 8, 1, 8>}, {pipeline_mode = #tpu.pipeline_mode<synchronous>, transform_indices = @transform_5, window_bounds = array<i64: 8, 8, 64>}, {pipeline_mode = #tpu.pipeline_mode<synchronous>, transform_indices = @transform_6, window_bounds = array<i64: 8, 1, 8>}, {pipeline_mode = #tpu.pipeline_mode<synchronous>, transform_indices = @transform_7, window_bounds = array<i64: 2, 64>}]} {
    %c0 = arith.constant 0 : index
    %c0_0 = arith.constant 0 : index
    %0 = vector.load %arg1[%c0, %c0_0] : memref<2x32xf32, #tpu.memory_space<vmem>>, vector<2x32xf32>
    %c0_1 = arith.constant 0 : index
    %c0_2 = arith.constant 0 : index
    %1 = vector.load %arg2[%c0_1, %c0_2] : memref<32x16xf32, #tpu.memory_space<vmem>>, vector<32x16xf32>
    %cst = arith.constant dense<0.000000e+00> : vector<2x16xf32>
    %2 = tpu.matmul %0, %1, %cst {dimension_numbers = #tpu.dot_dimension_numbers<[1], [0], [0], [1], [0, 0, 1, 1], [], []>} : vector<2x32xf32>, vector<32x16xf32>, vector<2x16xf32> -> vector<2x16xf32>
    %c0_3 = arith.constant 0 : index
    %c0_4 = arith.constant 0 : index
    %3 = vector.load %arg3[%c0_3, %c0_4] : memref<1x16xf32, #tpu.memory_space<vmem>>, vector<1x16xf32>
    %4 = vector.broadcast %3 : vector<1x16xf32> to vector<2x16xf32>
    %5 = arith.addf %2, %4 : vector<2x16xf32>
    %cst_5 = arith.constant 0.000000e+00 : f32
    %6 = vector.broadcast %cst_5 : f32 to vector<2x16xf32>
    %7 = arith.maximumf %5, %6 : vector<2x16xf32>
    %c0_6 = arith.constant 0 : index
    %c0_7 = arith.constant 0 : index
    %c0_8 = arith.constant 0 : index
    %8 = vector.load %arg4[%c0_6, %c0_7, %c0_8] : memref<8x16x8xf32, #tpu.memory_space<vmem>>, vector<1x16x8xf32>
    %9 = vector.shape_cast %8 : vector<1x16x8xf32> to vector<16x8xf32>
    %cst_9 = arith.constant dense<0.000000e+00> : vector<2x8xf32>
    %10 = tpu.matmul %7, %9, %cst_9 {dimension_numbers = #tpu.dot_dimension_numbers<[1], [0], [0], [1], [0, 0, 1, 1], [], []>} : vector<2x16xf32>, vector<16x8xf32>, vector<2x8xf32> -> vector<2x8xf32>
    %c0_10 = arith.constant 0 : index
    %c0_11 = arith.constant 0 : index
    %c0_12 = arith.constant 0 : index
    %11 = vector.load %arg5[%c0_10, %c0_11, %c0_12] : memref<8x1x8xf32, #tpu.memory_space<vmem>>, vector<1x1x8xf32>
    %12 = vector.shape_cast %11 : vector<1x1x8xf32> to vector<1x8xf32>
    %13 = vector.broadcast %12 : vector<1x8xf32> to vector<2x8xf32>
    %14 = arith.addf %10, %13 : vector<2x8xf32>
    %cst_13 = arith.constant 0.000000e+00 : f32
    %15 = vector.broadcast %cst_13 : f32 to vector<2x8xf32>
    %16 = arith.maximumf %14, %15 : vector<2x8xf32>
    %c1 = arith.constant 1 : index
    %c0_14 = arith.constant 0 : index
    %c0_15 = arith.constant 0 : index
    %17 = vector.load %arg4[%c1, %c0_14, %c0_15] : memref<8x16x8xf32, #tpu.memory_space<vmem>>, vector<1x16x8xf32>
    %18 = vector.shape_cast %17 : vector<1x16x8xf32> to vector<16x8xf32>
    %cst_16 = arith.constant dense<0.000000e+00> : vector<2x8xf32>
    %19 = tpu.matmul %7, %18, %cst_16 {dimension_numbers = #tpu.dot_dimension_numbers<[1], [0], [0], [1], [0, 0, 1, 1], [], []>} : vector<2x16xf32>, vector<16x8xf32>, vector<2x8xf32> -> vector<2x8xf32>
    %c1_17 = arith.constant 1 : index
    %c0_18 = arith.constant 0 : index
    %c0_19 = arith.constant 0 : index
    %20 = vector.load %arg5[%c1_17, %c0_18, %c0_19] : memref<8x1x8xf32, #tpu.memory_space<vmem>>, vector<1x1x8xf32>
    %21 = vector.shape_cast %20 : vector<1x1x8xf32> to vector<1x8xf32>
    %22 = vector.broadcast %21 : vector<1x8xf32> to vector<2x8xf32>
    %23 = arith.addf %19, %22 : vector<2x8xf32>
    %cst_20 = arith.constant 0.000000e+00 : f32
    %24 = vector.broadcast %cst_20 : f32 to vector<2x8xf32>
    %25 = arith.maximumf %23, %24 : vector<2x8xf32>
    %c2 = arith.constant 2 : index
    %c0_21 = arith.constant 0 : index
    %c0_22 = arith.constant 0 : index
    %26 = vector.load %arg4[%c2, %c0_21, %c0_22] : memref<8x16x8xf32, #tpu.memory_space<vmem>>, vector<1x16x8xf32>
    %27 = vector.shape_cast %26 : vector<1x16x8xf32> to vector<16x8xf32>
    %cst_23 = arith.constant dense<0.000000e+00> : vector<2x8xf32>
    %28 = tpu.matmul %7, %27, %cst_23 {dimension_numbers = #tpu.dot_dimension_numbers<[1], [0], [0], [1], [0, 0, 1, 1], [], []>} : vector<2x16xf32>, vector<16x8xf32>, vector<2x8xf32> -> vector<2x8xf32>
    %c2_24 = arith.constant 2 : index
    %c0_25 = arith.constant 0 : index
    %c0_26 = arith.constant 0 : index
    %29 = vector.load %arg5[%c2_24, %c0_25, %c0_26] : memref<8x1x8xf32, #tpu.memory_space<vmem>>, vector<1x1x8xf32>
    %30 = vector.shape_cast %29 : vector<1x1x8xf32> to vector<1x8xf32>
    %31 = vector.broadcast %30 : vector<1x8xf32> to vector<2x8xf32>
    %32 = arith.addf %28, %31 : vector<2x8xf32>
    %cst_27 = arith.constant 0.000000e+00 : f32
    %33 = vector.broadcast %cst_27 : f32 to vector<2x8xf32>
    %34 = arith.maximumf %32, %33 : vector<2x8xf32>
    %c3 = arith.constant 3 : index
    %c0_28 = arith.constant 0 : index
    %c0_29 = arith.constant 0 : index
    %35 = vector.load %arg4[%c3, %c0_28, %c0_29] : memref<8x16x8xf32, #tpu.memory_space<vmem>>, vector<1x16x8xf32>
    %36 = vector.shape_cast %35 : vector<1x16x8xf32> to vector<16x8xf32>
    %cst_30 = arith.constant dense<0.000000e+00> : vector<2x8xf32>
    %37 = tpu.matmul %7, %36, %cst_30 {dimension_numbers = #tpu.dot_dimension_numbers<[1], [0], [0], [1], [0, 0, 1, 1], [], []>} : vector<2x16xf32>, vector<16x8xf32>, vector<2x8xf32> -> vector<2x8xf32>
    %c3_31 = arith.constant 3 : index
    %c0_32 = arith.constant 0 : index
    %c0_33 = arith.constant 0 : index
    %38 = vector.load %arg5[%c3_31, %c0_32, %c0_33] : memref<8x1x8xf32, #tpu.memory_space<vmem>>, vector<1x1x8xf32>
    %39 = vector.shape_cast %38 : vector<1x1x8xf32> to vector<1x8xf32>
    %40 = vector.broadcast %39 : vector<1x8xf32> to vector<2x8xf32>
    %41 = arith.addf %37, %40 : vector<2x8xf32>
    %cst_34 = arith.constant 0.000000e+00 : f32
    %42 = vector.broadcast %cst_34 : f32 to vector<2x8xf32>
    %43 = arith.maximumf %41, %42 : vector<2x8xf32>
    %c4 = arith.constant 4 : index
    %c0_35 = arith.constant 0 : index
    %c0_36 = arith.constant 0 : index
    %44 = vector.load %arg4[%c4, %c0_35, %c0_36] : memref<8x16x8xf32, #tpu.memory_space<vmem>>, vector<1x16x8xf32>
    %45 = vector.shape_cast %44 : vector<1x16x8xf32> to vector<16x8xf32>
    %cst_37 = arith.constant dense<0.000000e+00> : vector<2x8xf32>
    %46 = tpu.matmul %7, %45, %cst_37 {dimension_numbers = #tpu.dot_dimension_numbers<[1], [0], [0], [1], [0, 0, 1, 1], [], []>} : vector<2x16xf32>, vector<16x8xf32>, vector<2x8xf32> -> vector<2x8xf32>
    %c4_38 = arith.constant 4 : index
    %c0_39 = arith.constant 0 : index
    %c0_40 = arith.constant 0 : index
    %47 = vector.load %arg5[%c4_38, %c0_39, %c0_40] : memref<8x1x8xf32, #tpu.memory_space<vmem>>, vector<1x1x8xf32>
    %48 = vector.shape_cast %47 : vector<1x1x8xf32> to vector<1x8xf32>
    %49 = vector.broadcast %48 : vector<1x8xf32> to vector<2x8xf32>
    %50 = arith.addf %46, %49 : vector<2x8xf32>
    %cst_41 = arith.constant 0.000000e+00 : f32
    %51 = vector.broadcast %cst_41 : f32 to vector<2x8xf32>
    %52 = arith.maximumf %50, %51 : vector<2x8xf32>
    %c5 = arith.constant 5 : index
    %c0_42 = arith.constant 0 : index
    %c0_43 = arith.constant 0 : index
    %53 = vector.load %arg4[%c5, %c0_42, %c0_43] : memref<8x16x8xf32, #tpu.memory_space<vmem>>, vector<1x16x8xf32>
    %54 = vector.shape_cast %53 : vector<1x16x8xf32> to vector<16x8xf32>
    %cst_44 = arith.constant dense<0.000000e+00> : vector<2x8xf32>
    %55 = tpu.matmul %7, %54, %cst_44 {dimension_numbers = #tpu.dot_dimension_numbers<[1], [0], [0], [1], [0, 0, 1, 1], [], []>} : vector<2x16xf32>, vector<16x8xf32>, vector<2x8xf32> -> vector<2x8xf32>
    %c5_45 = arith.constant 5 : index
    %c0_46 = arith.constant 0 : index
    %c0_47 = arith.constant 0 : index
    %56 = vector.load %arg5[%c5_45, %c0_46, %c0_47] : memref<8x1x8xf32, #tpu.memory_space<vmem>>, vector<1x1x8xf32>
    %57 = vector.shape_cast %56 : vector<1x1x8xf32> to vector<1x8xf32>
    %58 = vector.broadcast %57 : vector<1x8xf32> to vector<2x8xf32>
    %59 = arith.addf %55, %58 : vector<2x8xf32>
    %cst_48 = arith.constant 0.000000e+00 : f32
    %60 = vector.broadcast %cst_48 : f32 to vector<2x8xf32>
    %61 = arith.maximumf %59, %60 : vector<2x8xf32>
    %c6 = arith.constant 6 : index
    %c0_49 = arith.constant 0 : index
    %c0_50 = arith.constant 0 : index
    %62 = vector.load %arg4[%c6, %c0_49, %c0_50] : memref<8x16x8xf32, #tpu.memory_space<vmem>>, vector<1x16x8xf32>
    %63 = vector.shape_cast %62 : vector<1x16x8xf32> to vector<16x8xf32>
    %cst_51 = arith.constant dense<0.000000e+00> : vector<2x8xf32>
    %64 = tpu.matmul %7, %63, %cst_51 {dimension_numbers = #tpu.dot_dimension_numbers<[1], [0], [0], [1], [0, 0, 1, 1], [], []>} : vector<2x16xf32>, vector<16x8xf32>, vector<2x8xf32> -> vector<2x8xf32>
    %c6_52 = arith.constant 6 : index
    %c0_53 = arith.constant 0 : index
    %c0_54 = arith.constant 0 : index
    %65 = vector.load %arg5[%c6_52, %c0_53, %c0_54] : memref<8x1x8xf32, #tpu.memory_space<vmem>>, vector<1x1x8xf32>
    %66 = vector.shape_cast %65 : vector<1x1x8xf32> to vector<1x8xf32>
    %67 = vector.broadcast %66 : vector<1x8xf32> to vector<2x8xf32>
    %68 = arith.addf %64, %67 : vector<2x8xf32>
    %cst_55 = arith.constant 0.000000e+00 : f32
    %69 = vector.broadcast %cst_55 : f32 to vector<2x8xf32>
    %70 = arith.maximumf %68, %69 : vector<2x8xf32>
    %c7 = arith.constant 7 : index
    %c0_56 = arith.constant 0 : index
    %c0_57 = arith.constant 0 : index
    %71 = vector.load %arg4[%c7, %c0_56, %c0_57] : memref<8x16x8xf32, #tpu.memory_space<vmem>>, vector<1x16x8xf32>
    %72 = vector.shape_cast %71 : vector<1x16x8xf32> to vector<16x8xf32>
    %cst_58 = arith.constant dense<0.000000e+00> : vector<2x8xf32>
    %73 = tpu.matmul %7, %72, %cst_58 {dimension_numbers = #tpu.dot_dimension_numbers<[1], [0], [0], [1], [0, 0, 1, 1], [], []>} : vector<2x16xf32>, vector<16x8xf32>, vector<2x8xf32> -> vector<2x8xf32>
    %c7_59 = arith.constant 7 : index
    %c0_60 = arith.constant 0 : index
    %c0_61 = arith.constant 0 : index
    %74 = vector.load %arg5[%c7_59, %c0_60, %c0_61] : memref<8x1x8xf32, #tpu.memory_space<vmem>>, vector<1x1x8xf32>
    %75 = vector.shape_cast %74 : vector<1x1x8xf32> to vector<1x8xf32>
    %76 = vector.broadcast %75 : vector<1x8xf32> to vector<2x8xf32>
    %77 = arith.addf %73, %76 : vector<2x8xf32>
    %cst_62 = arith.constant 0.000000e+00 : f32
    %78 = vector.broadcast %cst_62 : f32 to vector<2x8xf32>
    %79 = arith.maximumf %77, %78 : vector<2x8xf32>
    %80 = arith.maximumf %16, %25 : vector<2x8xf32>
    %81 = arith.maximumf %80, %34 : vector<2x8xf32>
    %82 = arith.maximumf %81, %43 : vector<2x8xf32>
    %83 = arith.maximumf %82, %52 : vector<2x8xf32>
    %84 = arith.maximumf %83, %61 : vector<2x8xf32>
    %85 = arith.maximumf %84, %70 : vector<2x8xf32>
    %86 = arith.maximumf %85, %79 : vector<2x8xf32>
    %87 = arith.subf %16, %86 : vector<2x8xf32>
    %88 = math.exp %87 : vector<2x8xf32>
    %89 = arith.subf %25, %86 : vector<2x8xf32>
    %90 = math.exp %89 : vector<2x8xf32>
    %91 = arith.subf %34, %86 : vector<2x8xf32>
    %92 = math.exp %91 : vector<2x8xf32>
    %93 = arith.subf %43, %86 : vector<2x8xf32>
    %94 = math.exp %93 : vector<2x8xf32>
    %95 = arith.subf %52, %86 : vector<2x8xf32>
    %96 = math.exp %95 : vector<2x8xf32>
    %97 = arith.subf %61, %86 : vector<2x8xf32>
    %98 = math.exp %97 : vector<2x8xf32>
    %99 = arith.subf %70, %86 : vector<2x8xf32>
    %100 = math.exp %99 : vector<2x8xf32>
    %101 = arith.subf %79, %86 : vector<2x8xf32>
    %102 = math.exp %101 : vector<2x8xf32>
    %103 = arith.addf %88, %90 : vector<2x8xf32>
    %104 = arith.addf %103, %92 : vector<2x8xf32>
    %105 = arith.addf %104, %94 : vector<2x8xf32>
    %106 = arith.addf %105, %96 : vector<2x8xf32>
    %107 = arith.addf %106, %98 : vector<2x8xf32>
    %108 = arith.addf %107, %100 : vector<2x8xf32>
    %109 = arith.addf %108, %102 : vector<2x8xf32>
    %110 = tpu.reciprocal %109 {approx = true} : vector<2x8xf32> -> vector<2x8xf32>
    %111 = arith.mulf %88, %110 : vector<2x8xf32>
    %112 = arith.mulf %90, %110 : vector<2x8xf32>
    %113 = arith.mulf %92, %110 : vector<2x8xf32>
    %114 = arith.mulf %94, %110 : vector<2x8xf32>
    %115 = arith.mulf %96, %110 : vector<2x8xf32>
    %116 = arith.mulf %98, %110 : vector<2x8xf32>
    %117 = arith.mulf %100, %110 : vector<2x8xf32>
    %118 = arith.mulf %102, %110 : vector<2x8xf32>
    %c0_63 = arith.constant 0 : index
    %c0_64 = arith.constant 0 : index
    %c0_65 = arith.constant 0 : index
    %119 = vector.load %arg7[%c0_63, %c0_64, %c0_65] : memref<8x1x8xf32, #tpu.memory_space<vmem>>, vector<1x1x8xf32>
    %120 = vector.shape_cast %119 : vector<1x1x8xf32> to vector<1x8xf32>
    %121 = vector.broadcast %120 : vector<1x8xf32> to vector<2x8xf32>
    %122 = arith.mulf %111, %121 : vector<2x8xf32>
    %c1_66 = arith.constant 1 : index
    %c0_67 = arith.constant 0 : index
    %c0_68 = arith.constant 0 : index
    %123 = vector.load %arg7[%c1_66, %c0_67, %c0_68] : memref<8x1x8xf32, #tpu.memory_space<vmem>>, vector<1x1x8xf32>
    %124 = vector.shape_cast %123 : vector<1x1x8xf32> to vector<1x8xf32>
    %125 = vector.broadcast %124 : vector<1x8xf32> to vector<2x8xf32>
    %126 = arith.mulf %112, %125 : vector<2x8xf32>
    %c2_69 = arith.constant 2 : index
    %c0_70 = arith.constant 0 : index
    %c0_71 = arith.constant 0 : index
    %127 = vector.load %arg7[%c2_69, %c0_70, %c0_71] : memref<8x1x8xf32, #tpu.memory_space<vmem>>, vector<1x1x8xf32>
    %128 = vector.shape_cast %127 : vector<1x1x8xf32> to vector<1x8xf32>
    %129 = vector.broadcast %128 : vector<1x8xf32> to vector<2x8xf32>
    %130 = arith.mulf %113, %129 : vector<2x8xf32>
    %c3_72 = arith.constant 3 : index
    %c0_73 = arith.constant 0 : index
    %c0_74 = arith.constant 0 : index
    %131 = vector.load %arg7[%c3_72, %c0_73, %c0_74] : memref<8x1x8xf32, #tpu.memory_space<vmem>>, vector<1x1x8xf32>
    %132 = vector.shape_cast %131 : vector<1x1x8xf32> to vector<1x8xf32>
    %133 = vector.broadcast %132 : vector<1x8xf32> to vector<2x8xf32>
    %134 = arith.mulf %114, %133 : vector<2x8xf32>
    %c4_75 = arith.constant 4 : index
    %c0_76 = arith.constant 0 : index
    %c0_77 = arith.constant 0 : index
    %135 = vector.load %arg7[%c4_75, %c0_76, %c0_77] : memref<8x1x8xf32, #tpu.memory_space<vmem>>, vector<1x1x8xf32>
    %136 = vector.shape_cast %135 : vector<1x1x8xf32> to vector<1x8xf32>
    %137 = vector.broadcast %136 : vector<1x8xf32> to vector<2x8xf32>
    %138 = arith.mulf %115, %137 : vector<2x8xf32>
    %c5_78 = arith.constant 5 : index
    %c0_79 = arith.constant 0 : index
    %c0_80 = arith.constant 0 : index
    %139 = vector.load %arg7[%c5_78, %c0_79, %c0_80] : memref<8x1x8xf32, #tpu.memory_space<vmem>>, vector<1x1x8xf32>
    %140 = vector.shape_cast %139 : vector<1x1x8xf32> to vector<1x8xf32>
    %141 = vector.broadcast %140 : vector<1x8xf32> to vector<2x8xf32>
    %142 = arith.mulf %116, %141 : vector<2x8xf32>
    %c6_81 = arith.constant 6 : index
    %c0_82 = arith.constant 0 : index
    %c0_83 = arith.constant 0 : index
    %143 = vector.load %arg7[%c6_81, %c0_82, %c0_83] : memref<8x1x8xf32, #tpu.memory_space<vmem>>, vector<1x1x8xf32>
    %144 = vector.shape_cast %143 : vector<1x1x8xf32> to vector<1x8xf32>
    %145 = vector.broadcast %144 : vector<1x8xf32> to vector<2x8xf32>
    %146 = arith.mulf %117, %145 : vector<2x8xf32>
    %c7_84 = arith.constant 7 : index
    %c0_85 = arith.constant 0 : index
    %c0_86 = arith.constant 0 : index
    %147 = vector.load %arg7[%c7_84, %c0_85, %c0_86] : memref<8x1x8xf32, #tpu.memory_space<vmem>>, vector<1x1x8xf32>
    %148 = vector.shape_cast %147 : vector<1x1x8xf32> to vector<1x8xf32>
    %149 = vector.broadcast %148 : vector<1x8xf32> to vector<2x8xf32>
    %150 = arith.mulf %118, %149 : vector<2x8xf32>
    %151 = tpu.iota {dimensions = array<i32: 1>} : vector<2x8xi32>
    %cst_87 = arith.constant 0.000000e+00 : f32
    %152 = vector.broadcast %cst_87 : f32 to vector<2x64xf32>
    %cst_88 = arith.constant dense<0xFF800000> : vector<2xf32>
    %153 = vector.multi_reduction <maximumf>, %122, %cst_88 [1] : vector<2x8xf32> to vector<2xf32>
    %154 = vector.shape_cast %153 : vector<2xf32> to vector<2x1xf32>
    %155 = vector.broadcast %154 : vector<2x1xf32> to vector<2x8xf32>
    %156 = arith.cmpf oeq, %122, %155 : vector<2x8xf32>
    %c8_i32 = arith.constant 8 : i32
    %157 = vector.broadcast %c8_i32 : i32 to vector<2x8xi32>
    %158 = arith.select %156, %151, %157 : vector<2x8xi1>, vector<2x8xi32>
    %cst_89 = arith.constant dense<2147483647> : vector<2xi32>
    %159 = vector.multi_reduction <minsi>, %158, %cst_89 [1] : vector<2x8xi32> to vector<2xi32>
    %160 = vector.shape_cast %159 : vector<2xi32> to vector<2x1xi32>
    %161 = vector.broadcast %160 : vector<2x1xi32> to vector<2x8xi32>
    %162 = arith.cmpi eq, %151, %161 : vector<2x8xi32>
    %cst_90 = arith.constant 0xFF800000 : f32
    %163 = vector.broadcast %cst_90 : f32 to vector<2x8xf32>
    %164 = arith.select %162, %163, %122 : vector<2x8xi1>, vector<2x8xf32>
    %cst_91 = arith.constant dense<0xFF800000> : vector<2xf32>
    %165 = vector.multi_reduction <maximumf>, %164, %cst_91 [1] : vector<2x8xf32> to vector<2xf32>
    %166 = vector.shape_cast %165 : vector<2xf32> to vector<2x1xf32>
    %167 = vector.broadcast %166 : vector<2x1xf32> to vector<2x8xf32>
    %168 = arith.cmpf oeq, %164, %167 : vector<2x8xf32>
    %c8_i32_92 = arith.constant 8 : i32
    %169 = vector.broadcast %c8_i32_92 : i32 to vector<2x8xi32>
    %170 = arith.select %168, %151, %169 : vector<2x8xi1>, vector<2x8xi32>
    %cst_93 = arith.constant dense<2147483647> : vector<2xi32>
    %171 = vector.multi_reduction <minsi>, %170, %cst_93 [1] : vector<2x8xi32> to vector<2xi32>
    %172 = vector.shape_cast %171 : vector<2xi32> to vector<2x1xi32>
    %173 = vector.broadcast %172 : vector<2x1xi32> to vector<2x8xi32>
    %174 = arith.cmpi eq, %151, %173 : vector<2x8xi32>
    %cst_94 = arith.constant 0xFF800000 : f32
    %175 = vector.broadcast %cst_94 : f32 to vector<2x8xf32>
    %176 = arith.select %174, %175, %164 : vector<2x8xi1>, vector<2x8xf32>
    %cst_95 = arith.constant dense<0xFF800000> : vector<2xf32>
    %177 = vector.multi_reduction <maximumf>, %176, %cst_95 [1] : vector<2x8xf32> to vector<2xf32>
    %178 = vector.shape_cast %177 : vector<2xf32> to vector<2x1xf32>
    %179 = vector.broadcast %178 : vector<2x1xf32> to vector<2x8xf32>
    %180 = arith.cmpf ogt, %122, %179 : vector<2x8xf32>
    %cst_96 = arith.constant 1.000000e+00 : f32
    %cst_97 = arith.constant 0.000000e+00 : f32
    %181 = vector.broadcast %cst_96 : f32 to vector<2x8xf32>
    %182 = vector.broadcast %cst_97 : f32 to vector<2x8xf32>
    %183 = arith.select %180, %181, %182 : vector<2x8xi1>, vector<2x8xf32>
    %c0_98 = arith.constant 0 : index
    %c0_99 = arith.constant 0 : index
    %c0_100 = arith.constant 0 : index
    %184 = vector.load %arg6[%c0_98, %c0_99, %c0_100] : memref<8x8x64xf32, #tpu.memory_space<vmem>>, vector<1x8x64xf32>
    %185 = vector.shape_cast %184 : vector<1x8x64xf32> to vector<8x64xf32>
    %cst_101 = arith.constant dense<0.000000e+00> : vector<2x64xf32>
    %186 = tpu.matmul %183, %185, %cst_101 {dimension_numbers = #tpu.dot_dimension_numbers<[1], [0], [0], [1], [0, 0, 1, 1], [], []>} : vector<2x8xf32>, vector<8x64xf32>, vector<2x64xf32> -> vector<2x64xf32>
    %187 = arith.addf %152, %186 : vector<2x64xf32>
    %cst_102 = arith.constant dense<0xFF800000> : vector<2xf32>
    %188 = vector.multi_reduction <maximumf>, %126, %cst_102 [1] : vector<2x8xf32> to vector<2xf32>
    %189 = vector.shape_cast %188 : vector<2xf32> to vector<2x1xf32>
    %190 = vector.broadcast %189 : vector<2x1xf32> to vector<2x8xf32>
    %191 = arith.cmpf oeq, %126, %190 : vector<2x8xf32>
    %c8_i32_103 = arith.constant 8 : i32
    %192 = vector.broadcast %c8_i32_103 : i32 to vector<2x8xi32>
    %193 = arith.select %191, %151, %192 : vector<2x8xi1>, vector<2x8xi32>
    %cst_104 = arith.constant dense<2147483647> : vector<2xi32>
    %194 = vector.multi_reduction <minsi>, %193, %cst_104 [1] : vector<2x8xi32> to vector<2xi32>
    %195 = vector.shape_cast %194 : vector<2xi32> to vector<2x1xi32>
    %196 = vector.broadcast %195 : vector<2x1xi32> to vector<2x8xi32>
    %197 = arith.cmpi eq, %151, %196 : vector<2x8xi32>
    %cst_105 = arith.constant 0xFF800000 : f32
    %198 = vector.broadcast %cst_105 : f32 to vector<2x8xf32>
    %199 = arith.select %197, %198, %126 : vector<2x8xi1>, vector<2x8xf32>
    %cst_106 = arith.constant dense<0xFF800000> : vector<2xf32>
    %200 = vector.multi_reduction <maximumf>, %199, %cst_106 [1] : vector<2x8xf32> to vector<2xf32>
    %201 = vector.shape_cast %200 : vector<2xf32> to vector<2x1xf32>
    %202 = vector.broadcast %201 : vector<2x1xf32> to vector<2x8xf32>
    %203 = arith.cmpf oeq, %199, %202 : vector<2x8xf32>
    %c8_i32_107 = arith.constant 8 : i32
    %204 = vector.broadcast %c8_i32_107 : i32 to vector<2x8xi32>
    %205 = arith.select %203, %151, %204 : vector<2x8xi1>, vector<2x8xi32>
    %cst_108 = arith.constant dense<2147483647> : vector<2xi32>
    %206 = vector.multi_reduction <minsi>, %205, %cst_108 [1] : vector<2x8xi32> to vector<2xi32>
    %207 = vector.shape_cast %206 : vector<2xi32> to vector<2x1xi32>
    %208 = vector.broadcast %207 : vector<2x1xi32> to vector<2x8xi32>
    %209 = arith.cmpi eq, %151, %208 : vector<2x8xi32>
    %cst_109 = arith.constant 0xFF800000 : f32
    %210 = vector.broadcast %cst_109 : f32 to vector<2x8xf32>
    %211 = arith.select %209, %210, %199 : vector<2x8xi1>, vector<2x8xf32>
    %cst_110 = arith.constant dense<0xFF800000> : vector<2xf32>
    %212 = vector.multi_reduction <maximumf>, %211, %cst_110 [1] : vector<2x8xf32> to vector<2xf32>
    %213 = vector.shape_cast %212 : vector<2xf32> to vector<2x1xf32>
    %214 = vector.broadcast %213 : vector<2x1xf32> to vector<2x8xf32>
    %215 = arith.cmpf ogt, %126, %214 : vector<2x8xf32>
    %cst_111 = arith.constant 1.000000e+00 : f32
    %cst_112 = arith.constant 0.000000e+00 : f32
    %216 = vector.broadcast %cst_111 : f32 to vector<2x8xf32>
    %217 = vector.broadcast %cst_112 : f32 to vector<2x8xf32>
    %218 = arith.select %215, %216, %217 : vector<2x8xi1>, vector<2x8xf32>
    %c1_113 = arith.constant 1 : index
    %c0_114 = arith.constant 0 : index
    %c0_115 = arith.constant 0 : index
    %219 = vector.load %arg6[%c1_113, %c0_114, %c0_115] : memref<8x8x64xf32, #tpu.memory_space<vmem>>, vector<1x8x64xf32>
    %220 = vector.shape_cast %219 : vector<1x8x64xf32> to vector<8x64xf32>
    %cst_116 = arith.constant dense<0.000000e+00> : vector<2x64xf32>
    %221 = tpu.matmul %218, %220, %cst_116 {dimension_numbers = #tpu.dot_dimension_numbers<[1], [0], [0], [1], [0, 0, 1, 1], [], []>} : vector<2x8xf32>, vector<8x64xf32>, vector<2x64xf32> -> vector<2x64xf32>
    %222 = arith.addf %187, %221 : vector<2x64xf32>
    %cst_117 = arith.constant dense<0xFF800000> : vector<2xf32>
    %223 = vector.multi_reduction <maximumf>, %130, %cst_117 [1] : vector<2x8xf32> to vector<2xf32>
    %224 = vector.shape_cast %223 : vector<2xf32> to vector<2x1xf32>
    %225 = vector.broadcast %224 : vector<2x1xf32> to vector<2x8xf32>
    %226 = arith.cmpf oeq, %130, %225 : vector<2x8xf32>
    %c8_i32_118 = arith.constant 8 : i32
    %227 = vector.broadcast %c8_i32_118 : i32 to vector<2x8xi32>
    %228 = arith.select %226, %151, %227 : vector<2x8xi1>, vector<2x8xi32>
    %cst_119 = arith.constant dense<2147483647> : vector<2xi32>
    %229 = vector.multi_reduction <minsi>, %228, %cst_119 [1] : vector<2x8xi32> to vector<2xi32>
    %230 = vector.shape_cast %229 : vector<2xi32> to vector<2x1xi32>
    %231 = vector.broadcast %230 : vector<2x1xi32> to vector<2x8xi32>
    %232 = arith.cmpi eq, %151, %231 : vector<2x8xi32>
    %cst_120 = arith.constant 0xFF800000 : f32
    %233 = vector.broadcast %cst_120 : f32 to vector<2x8xf32>
    %234 = arith.select %232, %233, %130 : vector<2x8xi1>, vector<2x8xf32>
    %cst_121 = arith.constant dense<0xFF800000> : vector<2xf32>
    %235 = vector.multi_reduction <maximumf>, %234, %cst_121 [1] : vector<2x8xf32> to vector<2xf32>
    %236 = vector.shape_cast %235 : vector<2xf32> to vector<2x1xf32>
    %237 = vector.broadcast %236 : vector<2x1xf32> to vector<2x8xf32>
    %238 = arith.cmpf oeq, %234, %237 : vector<2x8xf32>
    %c8_i32_122 = arith.constant 8 : i32
    %239 = vector.broadcast %c8_i32_122 : i32 to vector<2x8xi32>
    %240 = arith.select %238, %151, %239 : vector<2x8xi1>, vector<2x8xi32>
    %cst_123 = arith.constant dense<2147483647> : vector<2xi32>
    %241 = vector.multi_reduction <minsi>, %240, %cst_123 [1] : vector<2x8xi32> to vector<2xi32>
    %242 = vector.shape_cast %241 : vector<2xi32> to vector<2x1xi32>
    %243 = vector.broadcast %242 : vector<2x1xi32> to vector<2x8xi32>
    %244 = arith.cmpi eq, %151, %243 : vector<2x8xi32>
    %cst_124 = arith.constant 0xFF800000 : f32
    %245 = vector.broadcast %cst_124 : f32 to vector<2x8xf32>
    %246 = arith.select %244, %245, %234 : vector<2x8xi1>, vector<2x8xf32>
    %cst_125 = arith.constant dense<0xFF800000> : vector<2xf32>
    %247 = vector.multi_reduction <maximumf>, %246, %cst_125 [1] : vector<2x8xf32> to vector<2xf32>
    %248 = vector.shape_cast %247 : vector<2xf32> to vector<2x1xf32>
    %249 = vector.broadcast %248 : vector<2x1xf32> to vector<2x8xf32>
    %250 = arith.cmpf ogt, %130, %249 : vector<2x8xf32>
    %cst_126 = arith.constant 1.000000e+00 : f32
    %cst_127 = arith.constant 0.000000e+00 : f32
    %251 = vector.broadcast %cst_126 : f32 to vector<2x8xf32>
    %252 = vector.broadcast %cst_127 : f32 to vector<2x8xf32>
    %253 = arith.select %250, %251, %252 : vector<2x8xi1>, vector<2x8xf32>
    %c2_128 = arith.constant 2 : index
    %c0_129 = arith.constant 0 : index
    %c0_130 = arith.constant 0 : index
    %254 = vector.load %arg6[%c2_128, %c0_129, %c0_130] : memref<8x8x64xf32, #tpu.memory_space<vmem>>, vector<1x8x64xf32>
    %255 = vector.shape_cast %254 : vector<1x8x64xf32> to vector<8x64xf32>
    %cst_131 = arith.constant dense<0.000000e+00> : vector<2x64xf32>
    %256 = tpu.matmul %253, %255, %cst_131 {dimension_numbers = #tpu.dot_dimension_numbers<[1], [0], [0], [1], [0, 0, 1, 1], [], []>} : vector<2x8xf32>, vector<8x64xf32>, vector<2x64xf32> -> vector<2x64xf32>
    %257 = arith.addf %222, %256 : vector<2x64xf32>
    %cst_132 = arith.constant dense<0xFF800000> : vector<2xf32>
    %258 = vector.multi_reduction <maximumf>, %134, %cst_132 [1] : vector<2x8xf32> to vector<2xf32>
    %259 = vector.shape_cast %258 : vector<2xf32> to vector<2x1xf32>
    %260 = vector.broadcast %259 : vector<2x1xf32> to vector<2x8xf32>
    %261 = arith.cmpf oeq, %134, %260 : vector<2x8xf32>
    %c8_i32_133 = arith.constant 8 : i32
    %262 = vector.broadcast %c8_i32_133 : i32 to vector<2x8xi32>
    %263 = arith.select %261, %151, %262 : vector<2x8xi1>, vector<2x8xi32>
    %cst_134 = arith.constant dense<2147483647> : vector<2xi32>
    %264 = vector.multi_reduction <minsi>, %263, %cst_134 [1] : vector<2x8xi32> to vector<2xi32>
    %265 = vector.shape_cast %264 : vector<2xi32> to vector<2x1xi32>
    %266 = vector.broadcast %265 : vector<2x1xi32> to vector<2x8xi32>
    %267 = arith.cmpi eq, %151, %266 : vector<2x8xi32>
    %cst_135 = arith.constant 0xFF800000 : f32
    %268 = vector.broadcast %cst_135 : f32 to vector<2x8xf32>
    %269 = arith.select %267, %268, %134 : vector<2x8xi1>, vector<2x8xf32>
    %cst_136 = arith.constant dense<0xFF800000> : vector<2xf32>
    %270 = vector.multi_reduction <maximumf>, %269, %cst_136 [1] : vector<2x8xf32> to vector<2xf32>
    %271 = vector.shape_cast %270 : vector<2xf32> to vector<2x1xf32>
    %272 = vector.broadcast %271 : vector<2x1xf32> to vector<2x8xf32>
    %273 = arith.cmpf oeq, %269, %272 : vector<2x8xf32>
    %c8_i32_137 = arith.constant 8 : i32
    %274 = vector.broadcast %c8_i32_137 : i32 to vector<2x8xi32>
    %275 = arith.select %273, %151, %274 : vector<2x8xi1>, vector<2x8xi32>
    %cst_138 = arith.constant dense<2147483647> : vector<2xi32>
    %276 = vector.multi_reduction <minsi>, %275, %cst_138 [1] : vector<2x8xi32> to vector<2xi32>
    %277 = vector.shape_cast %276 : vector<2xi32> to vector<2x1xi32>
    %278 = vector.broadcast %277 : vector<2x1xi32> to vector<2x8xi32>
    %279 = arith.cmpi eq, %151, %278 : vector<2x8xi32>
    %cst_139 = arith.constant 0xFF800000 : f32
    %280 = vector.broadcast %cst_139 : f32 to vector<2x8xf32>
    %281 = arith.select %279, %280, %269 : vector<2x8xi1>, vector<2x8xf32>
    %cst_140 = arith.constant dense<0xFF800000> : vector<2xf32>
    %282 = vector.multi_reduction <maximumf>, %281, %cst_140 [1] : vector<2x8xf32> to vector<2xf32>
    %283 = vector.shape_cast %282 : vector<2xf32> to vector<2x1xf32>
    %284 = vector.broadcast %283 : vector<2x1xf32> to vector<2x8xf32>
    %285 = arith.cmpf ogt, %134, %284 : vector<2x8xf32>
    %cst_141 = arith.constant 1.000000e+00 : f32
    %cst_142 = arith.constant 0.000000e+00 : f32
    %286 = vector.broadcast %cst_141 : f32 to vector<2x8xf32>
    %287 = vector.broadcast %cst_142 : f32 to vector<2x8xf32>
    %288 = arith.select %285, %286, %287 : vector<2x8xi1>, vector<2x8xf32>
    %c3_143 = arith.constant 3 : index
    %c0_144 = arith.constant 0 : index
    %c0_145 = arith.constant 0 : index
    %289 = vector.load %arg6[%c3_143, %c0_144, %c0_145] : memref<8x8x64xf32, #tpu.memory_space<vmem>>, vector<1x8x64xf32>
    %290 = vector.shape_cast %289 : vector<1x8x64xf32> to vector<8x64xf32>
    %cst_146 = arith.constant dense<0.000000e+00> : vector<2x64xf32>
    %291 = tpu.matmul %288, %290, %cst_146 {dimension_numbers = #tpu.dot_dimension_numbers<[1], [0], [0], [1], [0, 0, 1, 1], [], []>} : vector<2x8xf32>, vector<8x64xf32>, vector<2x64xf32> -> vector<2x64xf32>
    %292 = arith.addf %257, %291 : vector<2x64xf32>
    %cst_147 = arith.constant dense<0xFF800000> : vector<2xf32>
    %293 = vector.multi_reduction <maximumf>, %138, %cst_147 [1] : vector<2x8xf32> to vector<2xf32>
    %294 = vector.shape_cast %293 : vector<2xf32> to vector<2x1xf32>
    %295 = vector.broadcast %294 : vector<2x1xf32> to vector<2x8xf32>
    %296 = arith.cmpf oeq, %138, %295 : vector<2x8xf32>
    %c8_i32_148 = arith.constant 8 : i32
    %297 = vector.broadcast %c8_i32_148 : i32 to vector<2x8xi32>
    %298 = arith.select %296, %151, %297 : vector<2x8xi1>, vector<2x8xi32>
    %cst_149 = arith.constant dense<2147483647> : vector<2xi32>
    %299 = vector.multi_reduction <minsi>, %298, %cst_149 [1] : vector<2x8xi32> to vector<2xi32>
    %300 = vector.shape_cast %299 : vector<2xi32> to vector<2x1xi32>
    %301 = vector.broadcast %300 : vector<2x1xi32> to vector<2x8xi32>
    %302 = arith.cmpi eq, %151, %301 : vector<2x8xi32>
    %cst_150 = arith.constant 0xFF800000 : f32
    %303 = vector.broadcast %cst_150 : f32 to vector<2x8xf32>
    %304 = arith.select %302, %303, %138 : vector<2x8xi1>, vector<2x8xf32>
    %cst_151 = arith.constant dense<0xFF800000> : vector<2xf32>
    %305 = vector.multi_reduction <maximumf>, %304, %cst_151 [1] : vector<2x8xf32> to vector<2xf32>
    %306 = vector.shape_cast %305 : vector<2xf32> to vector<2x1xf32>
    %307 = vector.broadcast %306 : vector<2x1xf32> to vector<2x8xf32>
    %308 = arith.cmpf oeq, %304, %307 : vector<2x8xf32>
    %c8_i32_152 = arith.constant 8 : i32
    %309 = vector.broadcast %c8_i32_152 : i32 to vector<2x8xi32>
    %310 = arith.select %308, %151, %309 : vector<2x8xi1>, vector<2x8xi32>
    %cst_153 = arith.constant dense<2147483647> : vector<2xi32>
    %311 = vector.multi_reduction <minsi>, %310, %cst_153 [1] : vector<2x8xi32> to vector<2xi32>
    %312 = vector.shape_cast %311 : vector<2xi32> to vector<2x1xi32>
    %313 = vector.broadcast %312 : vector<2x1xi32> to vector<2x8xi32>
    %314 = arith.cmpi eq, %151, %313 : vector<2x8xi32>
    %cst_154 = arith.constant 0xFF800000 : f32
    %315 = vector.broadcast %cst_154 : f32 to vector<2x8xf32>
    %316 = arith.select %314, %315, %304 : vector<2x8xi1>, vector<2x8xf32>
    %cst_155 = arith.constant dense<0xFF800000> : vector<2xf32>
    %317 = vector.multi_reduction <maximumf>, %316, %cst_155 [1] : vector<2x8xf32> to vector<2xf32>
    %318 = vector.shape_cast %317 : vector<2xf32> to vector<2x1xf32>
    %319 = vector.broadcast %318 : vector<2x1xf32> to vector<2x8xf32>
    %320 = arith.cmpf ogt, %138, %319 : vector<2x8xf32>
    %cst_156 = arith.constant 1.000000e+00 : f32
    %cst_157 = arith.constant 0.000000e+00 : f32
    %321 = vector.broadcast %cst_156 : f32 to vector<2x8xf32>
    %322 = vector.broadcast %cst_157 : f32 to vector<2x8xf32>
    %323 = arith.select %320, %321, %322 : vector<2x8xi1>, vector<2x8xf32>
    %c4_158 = arith.constant 4 : index
    %c0_159 = arith.constant 0 : index
    %c0_160 = arith.constant 0 : index
    %324 = vector.load %arg6[%c4_158, %c0_159, %c0_160] : memref<8x8x64xf32, #tpu.memory_space<vmem>>, vector<1x8x64xf32>
    %325 = vector.shape_cast %324 : vector<1x8x64xf32> to vector<8x64xf32>
    %cst_161 = arith.constant dense<0.000000e+00> : vector<2x64xf32>
    %326 = tpu.matmul %323, %325, %cst_161 {dimension_numbers = #tpu.dot_dimension_numbers<[1], [0], [0], [1], [0, 0, 1, 1], [], []>} : vector<2x8xf32>, vector<8x64xf32>, vector<2x64xf32> -> vector<2x64xf32>
    %327 = arith.addf %292, %326 : vector<2x64xf32>
    %cst_162 = arith.constant dense<0xFF800000> : vector<2xf32>
    %328 = vector.multi_reduction <maximumf>, %142, %cst_162 [1] : vector<2x8xf32> to vector<2xf32>
    %329 = vector.shape_cast %328 : vector<2xf32> to vector<2x1xf32>
    %330 = vector.broadcast %329 : vector<2x1xf32> to vector<2x8xf32>
    %331 = arith.cmpf oeq, %142, %330 : vector<2x8xf32>
    %c8_i32_163 = arith.constant 8 : i32
    %332 = vector.broadcast %c8_i32_163 : i32 to vector<2x8xi32>
    %333 = arith.select %331, %151, %332 : vector<2x8xi1>, vector<2x8xi32>
    %cst_164 = arith.constant dense<2147483647> : vector<2xi32>
    %334 = vector.multi_reduction <minsi>, %333, %cst_164 [1] : vector<2x8xi32> to vector<2xi32>
    %335 = vector.shape_cast %334 : vector<2xi32> to vector<2x1xi32>
    %336 = vector.broadcast %335 : vector<2x1xi32> to vector<2x8xi32>
    %337 = arith.cmpi eq, %151, %336 : vector<2x8xi32>
    %cst_165 = arith.constant 0xFF800000 : f32
    %338 = vector.broadcast %cst_165 : f32 to vector<2x8xf32>
    %339 = arith.select %337, %338, %142 : vector<2x8xi1>, vector<2x8xf32>
    %cst_166 = arith.constant dense<0xFF800000> : vector<2xf32>
    %340 = vector.multi_reduction <maximumf>, %339, %cst_166 [1] : vector<2x8xf32> to vector<2xf32>
    %341 = vector.shape_cast %340 : vector<2xf32> to vector<2x1xf32>
    %342 = vector.broadcast %341 : vector<2x1xf32> to vector<2x8xf32>
    %343 = arith.cmpf oeq, %339, %342 : vector<2x8xf32>
    %c8_i32_167 = arith.constant 8 : i32
    %344 = vector.broadcast %c8_i32_167 : i32 to vector<2x8xi32>
    %345 = arith.select %343, %151, %344 : vector<2x8xi1>, vector<2x8xi32>
    %cst_168 = arith.constant dense<2147483647> : vector<2xi32>
    %346 = vector.multi_reduction <minsi>, %345, %cst_168 [1] : vector<2x8xi32> to vector<2xi32>
    %347 = vector.shape_cast %346 : vector<2xi32> to vector<2x1xi32>
    %348 = vector.broadcast %347 : vector<2x1xi32> to vector<2x8xi32>
    %349 = arith.cmpi eq, %151, %348 : vector<2x8xi32>
    %cst_169 = arith.constant 0xFF800000 : f32
    %350 = vector.broadcast %cst_169 : f32 to vector<2x8xf32>
    %351 = arith.select %349, %350, %339 : vector<2x8xi1>, vector<2x8xf32>
    %cst_170 = arith.constant dense<0xFF800000> : vector<2xf32>
    %352 = vector.multi_reduction <maximumf>, %351, %cst_170 [1] : vector<2x8xf32> to vector<2xf32>
    %353 = vector.shape_cast %352 : vector<2xf32> to vector<2x1xf32>
    %354 = vector.broadcast %353 : vector<2x1xf32> to vector<2x8xf32>
    %355 = arith.cmpf ogt, %142, %354 : vector<2x8xf32>
    %cst_171 = arith.constant 1.000000e+00 : f32
    %cst_172 = arith.constant 0.000000e+00 : f32
    %356 = vector.broadcast %cst_171 : f32 to vector<2x8xf32>
    %357 = vector.broadcast %cst_172 : f32 to vector<2x8xf32>
    %358 = arith.select %355, %356, %357 : vector<2x8xi1>, vector<2x8xf32>
    %c5_173 = arith.constant 5 : index
    %c0_174 = arith.constant 0 : index
    %c0_175 = arith.constant 0 : index
    %359 = vector.load %arg6[%c5_173, %c0_174, %c0_175] : memref<8x8x64xf32, #tpu.memory_space<vmem>>, vector<1x8x64xf32>
    %360 = vector.shape_cast %359 : vector<1x8x64xf32> to vector<8x64xf32>
    %cst_176 = arith.constant dense<0.000000e+00> : vector<2x64xf32>
    %361 = tpu.matmul %358, %360, %cst_176 {dimension_numbers = #tpu.dot_dimension_numbers<[1], [0], [0], [1], [0, 0, 1, 1], [], []>} : vector<2x8xf32>, vector<8x64xf32>, vector<2x64xf32> -> vector<2x64xf32>
    %362 = arith.addf %327, %361 : vector<2x64xf32>
    %cst_177 = arith.constant dense<0xFF800000> : vector<2xf32>
    %363 = vector.multi_reduction <maximumf>, %146, %cst_177 [1] : vector<2x8xf32> to vector<2xf32>
    %364 = vector.shape_cast %363 : vector<2xf32> to vector<2x1xf32>
    %365 = vector.broadcast %364 : vector<2x1xf32> to vector<2x8xf32>
    %366 = arith.cmpf oeq, %146, %365 : vector<2x8xf32>
    %c8_i32_178 = arith.constant 8 : i32
    %367 = vector.broadcast %c8_i32_178 : i32 to vector<2x8xi32>
    %368 = arith.select %366, %151, %367 : vector<2x8xi1>, vector<2x8xi32>
    %cst_179 = arith.constant dense<2147483647> : vector<2xi32>
    %369 = vector.multi_reduction <minsi>, %368, %cst_179 [1] : vector<2x8xi32> to vector<2xi32>
    %370 = vector.shape_cast %369 : vector<2xi32> to vector<2x1xi32>
    %371 = vector.broadcast %370 : vector<2x1xi32> to vector<2x8xi32>
    %372 = arith.cmpi eq, %151, %371 : vector<2x8xi32>
    %cst_180 = arith.constant 0xFF800000 : f32
    %373 = vector.broadcast %cst_180 : f32 to vector<2x8xf32>
    %374 = arith.select %372, %373, %146 : vector<2x8xi1>, vector<2x8xf32>
    %cst_181 = arith.constant dense<0xFF800000> : vector<2xf32>
    %375 = vector.multi_reduction <maximumf>, %374, %cst_181 [1] : vector<2x8xf32> to vector<2xf32>
    %376 = vector.shape_cast %375 : vector<2xf32> to vector<2x1xf32>
    %377 = vector.broadcast %376 : vector<2x1xf32> to vector<2x8xf32>
    %378 = arith.cmpf oeq, %374, %377 : vector<2x8xf32>
    %c8_i32_182 = arith.constant 8 : i32
    %379 = vector.broadcast %c8_i32_182 : i32 to vector<2x8xi32>
    %380 = arith.select %378, %151, %379 : vector<2x8xi1>, vector<2x8xi32>
    %cst_183 = arith.constant dense<2147483647> : vector<2xi32>
    %381 = vector.multi_reduction <minsi>, %380, %cst_183 [1] : vector<2x8xi32> to vector<2xi32>
    %382 = vector.shape_cast %381 : vector<2xi32> to vector<2x1xi32>
    %383 = vector.broadcast %382 : vector<2x1xi32> to vector<2x8xi32>
    %384 = arith.cmpi eq, %151, %383 : vector<2x8xi32>
    %cst_184 = arith.constant 0xFF800000 : f32
    %385 = vector.broadcast %cst_184 : f32 to vector<2x8xf32>
    %386 = arith.select %384, %385, %374 : vector<2x8xi1>, vector<2x8xf32>
    %cst_185 = arith.constant dense<0xFF800000> : vector<2xf32>
    %387 = vector.multi_reduction <maximumf>, %386, %cst_185 [1] : vector<2x8xf32> to vector<2xf32>
    %388 = vector.shape_cast %387 : vector<2xf32> to vector<2x1xf32>
    %389 = vector.broadcast %388 : vector<2x1xf32> to vector<2x8xf32>
    %390 = arith.cmpf ogt, %146, %389 : vector<2x8xf32>
    %cst_186 = arith.constant 1.000000e+00 : f32
    %cst_187 = arith.constant 0.000000e+00 : f32
    %391 = vector.broadcast %cst_186 : f32 to vector<2x8xf32>
    %392 = vector.broadcast %cst_187 : f32 to vector<2x8xf32>
    %393 = arith.select %390, %391, %392 : vector<2x8xi1>, vector<2x8xf32>
    %c6_188 = arith.constant 6 : index
    %c0_189 = arith.constant 0 : index
    %c0_190 = arith.constant 0 : index
    %394 = vector.load %arg6[%c6_188, %c0_189, %c0_190] : memref<8x8x64xf32, #tpu.memory_space<vmem>>, vector<1x8x64xf32>
    %395 = vector.shape_cast %394 : vector<1x8x64xf32> to vector<8x64xf32>
    %cst_191 = arith.constant dense<0.000000e+00> : vector<2x64xf32>
    %396 = tpu.matmul %393, %395, %cst_191 {dimension_numbers = #tpu.dot_dimension_numbers<[1], [0], [0], [1], [0, 0, 1, 1], [], []>} : vector<2x8xf32>, vector<8x64xf32>, vector<2x64xf32> -> vector<2x64xf32>
    %397 = arith.addf %362, %396 : vector<2x64xf32>
    %cst_192 = arith.constant dense<0xFF800000> : vector<2xf32>
    %398 = vector.multi_reduction <maximumf>, %150, %cst_192 [1] : vector<2x8xf32> to vector<2xf32>
    %399 = vector.shape_cast %398 : vector<2xf32> to vector<2x1xf32>
    %400 = vector.broadcast %399 : vector<2x1xf32> to vector<2x8xf32>
    %401 = arith.cmpf oeq, %150, %400 : vector<2x8xf32>
    %c8_i32_193 = arith.constant 8 : i32
    %402 = vector.broadcast %c8_i32_193 : i32 to vector<2x8xi32>
    %403 = arith.select %401, %151, %402 : vector<2x8xi1>, vector<2x8xi32>
    %cst_194 = arith.constant dense<2147483647> : vector<2xi32>
    %404 = vector.multi_reduction <minsi>, %403, %cst_194 [1] : vector<2x8xi32> to vector<2xi32>
    %405 = vector.shape_cast %404 : vector<2xi32> to vector<2x1xi32>
    %406 = vector.broadcast %405 : vector<2x1xi32> to vector<2x8xi32>
    %407 = arith.cmpi eq, %151, %406 : vector<2x8xi32>
    %cst_195 = arith.constant 0xFF800000 : f32
    %408 = vector.broadcast %cst_195 : f32 to vector<2x8xf32>
    %409 = arith.select %407, %408, %150 : vector<2x8xi1>, vector<2x8xf32>
    %cst_196 = arith.constant dense<0xFF800000> : vector<2xf32>
    %410 = vector.multi_reduction <maximumf>, %409, %cst_196 [1] : vector<2x8xf32> to vector<2xf32>
    %411 = vector.shape_cast %410 : vector<2xf32> to vector<2x1xf32>
    %412 = vector.broadcast %411 : vector<2x1xf32> to vector<2x8xf32>
    %413 = arith.cmpf oeq, %409, %412 : vector<2x8xf32>
    %c8_i32_197 = arith.constant 8 : i32
    %414 = vector.broadcast %c8_i32_197 : i32 to vector<2x8xi32>
    %415 = arith.select %413, %151, %414 : vector<2x8xi1>, vector<2x8xi32>
    %cst_198 = arith.constant dense<2147483647> : vector<2xi32>
    %416 = vector.multi_reduction <minsi>, %415, %cst_198 [1] : vector<2x8xi32> to vector<2xi32>
    %417 = vector.shape_cast %416 : vector<2xi32> to vector<2x1xi32>
    %418 = vector.broadcast %417 : vector<2x1xi32> to vector<2x8xi32>
    %419 = arith.cmpi eq, %151, %418 : vector<2x8xi32>
    %cst_199 = arith.constant 0xFF800000 : f32
    %420 = vector.broadcast %cst_199 : f32 to vector<2x8xf32>
    %421 = arith.select %419, %420, %409 : vector<2x8xi1>, vector<2x8xf32>
    %cst_200 = arith.constant dense<0xFF800000> : vector<2xf32>
    %422 = vector.multi_reduction <maximumf>, %421, %cst_200 [1] : vector<2x8xf32> to vector<2xf32>
    %423 = vector.shape_cast %422 : vector<2xf32> to vector<2x1xf32>
    %424 = vector.broadcast %423 : vector<2x1xf32> to vector<2x8xf32>
    %425 = arith.cmpf ogt, %150, %424 : vector<2x8xf32>
    %cst_201 = arith.constant 1.000000e+00 : f32
    %cst_202 = arith.constant 0.000000e+00 : f32
    %426 = vector.broadcast %cst_201 : f32 to vector<2x8xf32>
    %427 = vector.broadcast %cst_202 : f32 to vector<2x8xf32>
    %428 = arith.select %425, %426, %427 : vector<2x8xi1>, vector<2x8xf32>
    %c7_203 = arith.constant 7 : index
    %c0_204 = arith.constant 0 : index
    %c0_205 = arith.constant 0 : index
    %429 = vector.load %arg6[%c7_203, %c0_204, %c0_205] : memref<8x8x64xf32, #tpu.memory_space<vmem>>, vector<1x8x64xf32>
    %430 = vector.shape_cast %429 : vector<1x8x64xf32> to vector<8x64xf32>
    %cst_206 = arith.constant dense<0.000000e+00> : vector<2x64xf32>
    %431 = tpu.matmul %428, %430, %cst_206 {dimension_numbers = #tpu.dot_dimension_numbers<[1], [0], [0], [1], [0, 0, 1, 1], [], []>} : vector<2x8xf32>, vector<8x64xf32>, vector<2x64xf32> -> vector<2x64xf32>
    %432 = arith.addf %397, %431 : vector<2x64xf32>
    %c0_207 = arith.constant 0 : index
    %c0_208 = arith.constant 0 : index
    %433 = vector.load %arg8[%c0_207, %c0_208] : memref<2x64xf32, #tpu.memory_space<vmem>>, vector<2x64xf32>
    tpu.vector_store %arg8[%c0_207, %c0_208], %432 {strides = array<i32>} : memref<2x64xf32, #tpu.memory_space<vmem>>, vector<2x64xf32>,
    return
  }
  func.func @transform_0(%arg0: i32) -> (i32, i32) {
    %c0_i32 = arith.constant 0 : i32
    %c0_i32_0 = arith.constant 0 : i32
    %c0_i32_1 = arith.constant 0 : i32
    return %c0_i32, %c0_i32_0 : i32, i32
  }
  func.func @transform_1(%arg0: i32) -> (i32, i32) {
    %c0_i32 = arith.constant 0 : i32
    %c0_i32_0 = arith.constant 0 : i32
    %c0_i32_1 = arith.constant 0 : i32
    return %c0_i32, %c0_i32_0 : i32, i32
  }
  func.func @transform_2(%arg0: i32) -> (i32, i32) {
    %c0_i32 = arith.constant 0 : i32
    %c0_i32_0 = arith.constant 0 : i32
    %c0_i32_1 = arith.constant 0 : i32
    return %c0_i32, %c0_i32_0 : i32, i32
  }
  func.func @transform_3(%arg0: i32) -> (i32, i32, i32) {
    %c0_i32 = arith.constant 0 : i32
    %c0_i32_0 = arith.constant 0 : i32
    %c0_i32_1 = arith.constant 0 : i32
    %c0_i32_2 = arith.constant 0 : i32
    return %c0_i32, %c0_i32_0, %c0_i32_1 : i32, i32, i32
  }
  func.func @transform_4(%arg0: i32) -> (i32, i32, i32) {
    %c0_i32 = arith.constant 0 : i32
    %c0_i32_0 = arith.constant 0 : i32
    %c0_i32_1 = arith.constant 0 : i32
    %c0_i32_2 = arith.constant 0 : i32
    return %c0_i32, %c0_i32_0, %c0_i32_1 : i32, i32, i32
  }
  func.func @transform_5(%arg0: i32) -> (i32, i32, i32) {
    %c0_i32 = arith.constant 0 : i32
    %c0_i32_0 = arith.constant 0 : i32
    %c0_i32_1 = arith.constant 0 : i32
    %c0_i32_2 = arith.constant 0 : i32
    return %c0_i32, %c0_i32_0, %c0_i32_1 : i32, i32, i32
  }
  func.func @transform_6(%arg0: i32) -> (i32, i32, i32) {
    %c0_i32 = arith.constant 0 : i32
    %c0_i32_0 = arith.constant 0 : i32
    %c0_i32_1 = arith.constant 0 : i32
    %c0_i32_2 = arith.constant 0 : i32
    return %c0_i32, %c0_i32_0, %c0_i32_1 : i32, i32, i32
  }
  func.func @transform_7(%arg0: i32) -> (i32, i32) {
    %c0_i32 = arith.constant 0 : i32
    %c0_i32_0 = arith.constant 0 : i32
    %c0_i32_1 = arith.constant 0 : i32
    return %c0_i32, %c0_i32_0 : i32, i32
  }
}

</mosaic_0001>

<bundles_post_ra>
// kernel: tpu_custom_call.1
= control target key start
LH: loop header
LB: loop body
LE: loop exit
PB: predicated region body
PF: predicated region fallthrough
CT: control target
= control target key end

     0   :  { %v2218_v3 = vmov 0.0|0.0   ;;  %vm2219_vm0 = vmmov 0   ;;  %v2220_v6 = vmov 0.0   ;;  %s2654_s0 = inlined_call_operand.vmem [shape: f32[2,32], index: 0, kind: input, shape index: {}]   ;;  %s2655_s1 = inlined_call_operand.vmem [shape: f32[32,16], index: 1, kind: input, shape index: {}]   ;;  %s2656_s2 = inlined_call_operand.vmem [shape: f32[1,16], index: 2, kind: input, shape index: {}]   ;;  %s2657_s3 = inlined_call_operand.vmem [shape: f32[8,16,8], index: 3, kind: input, shape index: {}]   ;;  %s2658_s4 = inlined_call_operand.vmem [shape: f32[8,1,8], index: 4, kind: input, shape index: {}]   ;;  %s2659_s5 = inlined_call_operand.vmem [shape: f32[8,8,64], index: 5, kind: input, shape index: {}]   ;;  %s2660_s6 = inlined_call_operand.vmem [shape: f32[8,1,8], index: 6, kind: input, shape index: {}]   ;;  %s2661_s7 = inlined_call_operand.hbm [shape: f32[2,64], index: 7, kind: output, shape index: {}]  }
   0x1   :  { %v28_v0 = vld [vmem:[%s2655_s1] sm:$0xff]  ;;  %v29_v1 = vld [vmem:[%s2655_s1 + $0x8] sm:$0xff]  ;;  %v30_v2 = vld [vmem:[%s2655_s1 + $0x10] sm:$0xff]  ;;  %2128 = vmatprep.subr.bf16.mxu1 %v2218_v3  ;;  %2029 = vmatprep.mubr.msk.f32.mxu1 %vm2219_vm0, %v2220_v6 }
   0x2   :  { %v2129_v4 = vpack.c.bf16 %v29_v1, %v28_v0  ;;  %v31_v5 = vld [vmem:[%s2655_s1 + $0x18] sm:$0xff]  ;;  %2152 = vmatprep.subr.bf16.mxu0 %v2218_v3  ;;  %2078 = vmatprep.mubr.msk.f32.mxu0 %vm2219_vm0, %v2220_v6 }
   0x3   :  { %12 = vsyncpa [#allocation3], 0  ;;  %v2132_v7 = vpack.c.bf16 %v31_v5, %v30_v2  ;;  %v27_v8 = vld [vmem:[%s2654_s0] sm:$0x3]  ;;  %vm39_vm1 = vcmask 261120   ;;  %v115_v10 = vld [vmem:[%s2657_s3 + $0x8] sm:$0xff] }
   0x4   :  { %2130 = vmatpush3.bf16.msra.mxu1 %v2129_v4  ;;  %v114_v9 = vld [vmem:[%s2657_s3] sm:$0xff]  ;;  %v1937_v13 = vld [vmem:[%s2657_s3 + $0x68] sm:$0xff]  ;;  %v1911_v16 = vld [vmem:[%s2657_s3 + $0x10] sm:$0xff]  ;;  %vm123_vm2 = vcmask 130048   ;;  %vm892_vm3 = vcmask 58368   ;;  %s2221_s10 = smov [#allocation2]  }
   0x5   :  { %2131 = vmatprep.subr.bf16.mxu1 %v2218_v3  ;;  %v1936_v11 = vld [vmem:[%s2657_s3 + $0x60] sm:$0xff]  ;;  %v2135_v12 = vpack.c.bf16 %v115_v10, %v114_v9  ;;  %v1912_v17 = vld [vmem:[%s2657_s3 + $0x18] sm:$0xff]  ;;  %v1917_v24 = vld [vmem:[%s2657_s3 + $0x28] sm:$0xff]  ;;  %s1899_s1 = sshll.u32 %s2221_s10, 4  ;;  %s1900_s1 = int_to_ptr.vmem [resolvable:$true] %s1899_s1 }
   0x6   :  { %v2153_v14 = vpack.c.bf16 %v1937_v13, %v1936_v11  ;;  %v1907_v15 = vld [vmem:[%s2656_s2] ss:$0 sm:$0xff]  ;;  %v2138_v21 = vpack.c.bf16 %v1912_v17, %v1911_v16  ;;  %v1921_v26 = vld [vmem:[%s2657_s3 + $0x30] sm:$0xff]  ;;  %v1922_v27 = vld [vmem:[%s2657_s3 + $0x38] sm:$0xff]  ;;  %p2199_p1 = scmp.lt.s32.totalorder %s1900_s1, %s1900_s1 }
   0x7   :  { %v1916_v23 = vld [vmem:[%s2657_s3 + $0x20] sm:$0xff]  ;;  %v2144_v28 = vpack.c.bf16 %v1922_v27, %v1921_v26  ;;  %v1927_v30 = vld [vmem:[%s2657_s3 + $0x48] sm:$0xff]  ;;  %v1931_v32 = vld [vmem:[%s2657_s3 + $0x50] sm:$0xff] }
   0x8   :  { %2133 = vmatpush3.bf16.msra.mxu1 %v2132_v7  ;;  %2154 = vmatpush3.bf16.msra.mxu0 %v2153_v14  ;;  %v2141_v25 = vpack.c.bf16 %v1917_v24, %v1916_v23  ;;  %v1926_v29 = vld [vmem:[%s2657_s3 + $0x40] sm:$0xff]  ;;  %v1932_v33 = vld [vmem:[%s2657_s3 + $0x58] sm:$0xff]  ;;  %v1941_v35 = vld [vmem:[%s2657_s3 + $0x70] sm:$0xff] }
   0x9   :  { %2134 = vmatprep.subr.bf16.mxu1 %v2218_v3  ;;  %2088 = vmatprep.subr.mxu0 %v2220_v6  ;;  %v2147_v31 = vpack.c.bf16 %v1927_v30, %v1926_v29  ;;  %v2150_v34 = vpack.c.bf16 %v1932_v33, %v1931_v32  ;;  %v1942_v36 = vld [vmem:[%s2657_s3 + $0x78] sm:$0xff]  ;;  %v1909_v38 = vld [vmem:[%s2658_s4] ss:$0 sm:$0xff]  ;;  %v1914_v43 = vld [vmem:[%s2658_s4 + $0x1] ss:$0 sm:$0xff] }
   0xa   :  { %v2156_v37 = vpack.c.bf16 %v1942_v36, %v1941_v35  ;;  %v1919_v48 = vld [vmem:[%s2658_s4 + $0x2] ss:$0 sm:$0xff]  ;;  %v1924_v55 = vld [vmem:[%s2658_s4 + $0x3] ss:$0 sm:$0xff]  ;;  %v1929_v61 = vld [vmem:[%s2658_s4 + $0x4] ss:$0 sm:$0xff] }
   0xb   :  { %2030 = vmatmul.mubr.msk.f32.vlgmr.msra.gmra.mrb[0].mxu1 %vm39_vm1, %v27_v8  ;;  %v1934_v4 = vld [vmem:[%s2658_s4 + $0x5] ss:$0 sm:$0xff] }
   0xc   :  { %2036 = vmatprep.mubr.msk.f32.mxu1 %vm2219_vm0, %v2220_v6  ;;  %2136 = vmatpush3.bf16.msra.mxu1 %v2135_v12  ;;  %v1944_v12 = vld [vmem:[%s2658_s4 + $0x7] ss:$0 sm:$0xff] }
   0xd   :  { %2137 = vmatprep.subr.bf16.mxu1 %v2218_v3 }
  0xde   :  { %v109_v18 = vpop.f32.mrb[0].mxu1 }
  0xdf   :  { %v110_v19 = vadd.f32 %v1907_v15, %v109_v18  ;;  %v2031_v20 = vpop.f32.mrb[1].mxu1 }
  0xe1   :  { %v113_v22 = vmax.f32 %v110_v19, 0.0 }
  0xe3   :  { %2037 = vmatmul.mubr.msk.f32.vlgmr.msra.gmra.mrb[2].mxu1 %vm123_vm2, %v113_v22  ;;  %2079 = vmatmul.mubr.msk.f32.vlgmr.msra.gmra.mrb[0].mxu0 %vm123_vm2, %v113_v22 }
  0xe4   :  { %2139 = vmatpush3.bf16.msra.mxu1 %v2138_v21  ;;  %2043 = vmatprep.mubr.msk.f32.mxu1 %vm2219_vm0, %v2220_v6 }
  0xe5   :  { %2140 = vmatprep.subr.bf16.mxu1 %v2218_v3  ;;  %2090 = vmatprep.mubr.msk.f32.mxu0 %vm2219_vm0, %v2220_v6 }
  0xe7   :  { %2044 = vmatmul.mubr.msk.f32.vlgmr.msra.gmra.mrb[4].mxu1 %vm123_vm2, %v113_v22 }
  0xe8   :  { %2142 = vmatpush3.bf16.msra.mxu1 %v2141_v25  ;;  %2050 = vmatprep.mubr.msk.f32.mxu1 %vm2219_vm0, %v2220_v6 }
  0xe9   :  { %2143 = vmatprep.subr.bf16.mxu1 %v2218_v3 }
  0xeb   :  { %2051 = vmatmul.mubr.msk.f32.vlgmr.msra.gmra.mrb[6].mxu1 %vm123_vm2, %v113_v22 }
  0xec   :  { %2145 = vmatpush3.bf16.msra.mxu1 %v2144_v28  ;;  %2057 = vmatprep.mubr.msk.f32.mxu1 %vm2219_vm0, %v2220_v6 }
  0xed   :  { %2146 = vmatprep.subr.bf16.mxu1 %v2218_v3 }
  0xef   :  { %2058 = vmatmul.mubr.msk.f32.vlgmr.msra.gmra.mrb[8].mxu1 %vm123_vm2, %v113_v22 }
  0xf0   :  { %2148 = vmatpush3.bf16.msra.mxu1 %v2147_v31  ;;  %2064 = vmatprep.mubr.msk.f32.mxu1 %vm2219_vm0, %v2220_v6 }
  0xf1   :  { %2149 = vmatprep.subr.bf16.mxu1 %v2218_v3 }
  0xf3   :  { %2065 = vmatmul.mubr.msk.f32.vlgmr.msra.gmra.mrb[10].mxu1 %vm123_vm2, %v113_v22 }
  0xf4   :  { %2151 = vmatpush3.bf16.msra.mxu1 %v2150_v34  ;;  %2071 = vmatprep.mubr.msk.f32.mxu1 %vm2219_vm0, %v2220_v6 }
  0xf5   :  { %2155 = vmatprep.subr.bf16.mxu1 %v2218_v3  ;;  %v1939_v3 = vld [vmem:[%s2658_s4 + $0x6] ss:$0 sm:$0xff] }
  0xf7   :  { %2072 = vmatmul.mubr.msk.f32.vlgmr.msra.gmra.mrb[12].mxu1 %vm123_vm2, %v113_v22 }
  0xf8   :  { %2157 = vmatpush3.bf16.msra.mxu1 %v2156_v37  ;;  %2085 = vmatprep.mubr.msk.f32.mxu1 %vm2219_vm0, %v2220_v6 }
  0xfb   :  { %2086 = vmatmul.mubr.msk.f32.vlgmr.msra.gmra.mrb[14].mxu1 %vm123_vm2, %v113_v22 }
 0x1b6   :  { %v193_v39 = vpop.f32.mrb[2].mxu1  ;;  %v685_v40 = vpop.f32.mrb[0].mxu0 }
 0x1b7   :  { %v2038_v41 = vpop.f32.mrb[3].mxu1  ;;  %v2080_v42 = vpop.f32.mrb[1].mxu0  ;;  %v194_v44 = vadd.f32 %v1909_v38, %v193_v39  ;;  %v686_v8 = vadd.f32 %v1939_v3, %v685_v40 }
 0x1b9   :  { %v197_v49 = vmax.f32 %v194_v44, 0.0  ;;  %v689_v15 = vmax.f32 %v686_v8, 0.0 }
 0x1ba   :  { %v275_v45 = vpop.f32.mrb[4].mxu1 }
 0x1bb   :  { %v276_v46 = vadd.f32 %v1914_v43, %v275_v45  ;;  %v2045_v47 = vpop.f32.mrb[5].mxu1 }
 0x1bd   :  { %v279_v50 = vmax.f32 %v276_v46, 0.0 }
 0x1be   :  { %v357_v51 = vpop.f32.mrb[6].mxu1 }
 0x1bf   :  { %v772_v52 = vmax.f32 %v197_v49, %v279_v50  ;;  %v358_v53 = vadd.f32 %v1919_v48, %v357_v51  ;;  %v2052_v54 = vpop.f32.mrb[7].mxu1 }
 0x1c0   :  { %v1950_v54 = vld [vmem:[%s2660_s6 + $0x2] ss:$0 sm:$0xff] }
 0x1c1   :  { %v361_v56 = vmax.f32 %v358_v53, 0.0 }
 0x1c2   :  { %v439_v57 = vpop.f32.mrb[8].mxu1 }
 0x1c3   :  { %v773_v58 = vmax.f32 %v772_v52, %v361_v56  ;;  %v440_v59 = vadd.f32 %v1924_v55, %v439_v57  ;;  %v2059_v60 = vpop.f32.mrb[9].mxu1  ;;  %v1948_v55 = vld [vmem:[%s2660_s6 + $0x1] ss:$0 sm:$0xff] }
 0x1c4   :  { %v1952_v60 = vld [vmem:[%s2660_s6 + $0x3] ss:$0 sm:$0xff] }
 0x1c5   :  { %v443_v62 = vmax.f32 %v440_v59, 0.0 }
 0x1c6   :  { %v521_v63 = vpop.f32.mrb[10].mxu1 }
 0x1c7   :  { %v774_v0 = vmax.f32 %v773_v58, %v443_v62  ;;  %v522_v1 = vadd.f32 %v1929_v61, %v521_v63  ;;  %v2066_v2 = vpop.f32.mrb[11].mxu1  ;;  %v1946_v61 = vld [vmem:[%s2660_s6] ss:$0 sm:$0xff] }
 0x1c9   :  { %v525_v5 = vmax.f32 %v522_v1, 0.0 }
 0x1ca   :  { %v603_v7 = vpop.f32.mrb[12].mxu1 }
 0x1cb   :  { %v775_v9 = vmax.f32 %v774_v0, %v525_v5  ;;  %v604_v10 = vadd.f32 %v1934_v4, %v603_v7  ;;  %v2073_v11 = vpop.f32.mrb[13].mxu1 }
 0x1cd   :  { %v607_v13 = vmax.f32 %v604_v10, 0.0  ;;  %v1954_v10 = vld [vmem:[%s2660_s6 + $0x4] ss:$0 sm:$0xff] }
 0x1ce   :  { %v767_v14 = vpop.f32.mrb[14].mxu1 }
 0x1cf   :  { %v776_v16 = vmax.f32 %v775_v9, %v607_v13  ;;  %v768_v17 = vadd.f32 %v1944_v12, %v767_v14  ;;  %v2087_v18 = vpop.f32.mrb[15].mxu1  ;;  %v1956_v9 = vld [vmem:[%s2660_s6 + $0x5] ss:$0 sm:$0xff] }
 0x1d1   :  { %v771_v19 = vmax.f32 %v768_v17, 0.0  ;;  %v777_v20 = vmax.f32 %v776_v16, %v689_v15  ;;  %v1958_v16 = vld [vmem:[%s2660_s6 + $0x6] ss:$0 sm:$0xff] }
 0x1d3   :  { %v778_v21 = vmax.f32 %v777_v20, %v771_v19 }
 0x1d5   :  { %v779_v22 = vsub.f32 %v197_v49, %v778_v21  ;;  %v782_v23 = vsub.f32 %v279_v50, %v778_v21  ;;  %v785_v24 = vsub.f32 %v361_v56, %v778_v21  ;;  %v788_v25 = vsub.f32 %v443_v62, %v778_v21 }
 0x1d6   :  { %v791_v26 = vsub.f32 %v525_v5, %v778_v21  ;;  %v794_v27 = vsub.f32 %v607_v13, %v778_v21  ;;  %v797_v28 = vsub.f32 %v689_v15, %v778_v21  ;;  %v800_v29 = vsub.f32 %v771_v19, %v778_v21  ;;  %v1960_v15 = vld [vmem:[%s2660_s6 + $0x7] ss:$0 sm:$0xff] }
 0x1d7   :  { %v780_v30 = vmul.f32 1.442695, %v779_v22  ;;  %v783_v31 = vmul.f32 1.442695, %v782_v23  ;;  %v786_v32 = vmul.f32 1.442695, %v785_v24  ;;  %v890_v23 = vlaneseq }
 0x1d8   :  { %v789_v33 = vmul.f32 1.442695, %v788_v25  ;;  %v792_v34 = vmul.f32 1.442695, %v791_v26  ;;  %v795_v35 = vmul.f32 1.442695, %v794_v27 }
 0x1d9   :  { %2176 = vpow2.f32 %v780_v30  ;;  %v798_v36 = vmul.f32 1.442695, %v797_v28  ;;  %v801_v37 = vmul.f32 1.442695, %v800_v29  ;;  %v2447_v24 = vand.u32 127, %v890_v23 }
 0x1da   :  { %2178 = vpow2.f32 %v783_v31 }
 0x1db   :  { %2180 = vpow2.f32 %v786_v32 }
 0x1dc   :  { %2182 = vpow2.f32 %v789_v33 }
 0x1dd   :  { %2184 = vpow2.f32 %v792_v34 }
 0x1de   :  { %2186 = vpow2.f32 %v795_v35 }
 0x1df   :  { %2188 = vpow2.f32 %v798_v36 }
 0x1e0   :  { %2190 = vpow2.f32 %v801_v37 }
 0x1e3   :  { %v2177_v38 = vpop.eup %2176 }
 0x1e4   :  { %v2179_v39 = vpop.eup %2178 }
 0x1e5   :  { %v803_v40 = vadd.f32 %v2179_v39, %v2177_v38  ;;  %v2181_v41 = vpop.eup %2180 }
 0x1e6   :  { %v2183_v43 = vpop.eup %2182 }
 0x1e7   :  { %v804_v42 = vadd.f32 %v2181_v41, %v803_v40  ;;  %v2185_v45 = vpop.eup %2184 }
 0x1e8   :  { %v2187_v47 = vpop.eup %2186 }
 0x1e9   :  { %v805_v44 = vadd.f32 %v2183_v43, %v804_v42  ;;  %v2189_v49 = vpop.eup %2188 }
 0x1ea   :  { %v2191_v51 = vpop.eup %2190 }
 0x1eb   :  { %v806_v46 = vadd.f32 %v2185_v45, %v805_v44 }
 0x1ed   :  { %v807_v48 = vadd.f32 %v2187_v47, %v806_v46 }
 0x1ef   :  { %v808_v50 = vadd.f32 %v2189_v49, %v807_v48 }
 0x1f1   :  { %v809_v52 = vadd.f32 %v2191_v51, %v808_v50 }
 0x1f3   :  { %2192 = vrcp.f32 %v809_v52 }
 0x1fd   :  { %v2193_v53 = vpop.eup %2192 }
 0x1fe   :  { %v813_v56 = vmul.f32 %v2193_v53, %v2181_v41  ;;  %v812_v57 = vmul.f32 %v2193_v53, %v2179_v39  ;;  %v814_v58 = vmul.f32 %v2193_v53, %v2183_v43  ;;  %v811_v59 = vmul.f32 %v2193_v53, %v2177_v38 }
 0x1ff   :  { %v816_v62 = vmul.f32 %v2193_v53, %v2187_v47  ;;  %v815_v63 = vmul.f32 %v2193_v53, %v2185_v45  ;;  %v818_v0 = vmul.f32 %v2193_v53, %v2191_v51  ;;  %v817_v1 = vmul.f32 %v2193_v53, %v2189_v49 }
 0x200   :  { %v2403_v2 = vmul.f32 %v1950_v54, %v813_v56  ;;  %v2405_v3 = vmul.f32 %v1948_v55, %v812_v57  ;;  %v2411_v7 = vmul.f32 %v1952_v60, %v814_v58  ;;  %v2413_v8 = vmul.f32 %v1946_v61, %v811_v59 }
 0x201   :  { %v2425_v13 = vmul.f32 %v1956_v9, %v816_v62  ;;  %v2427_v14 = vmul.f32 %v1954_v10, %v815_v63  ;;  %v2439_v19 = vmul.f32 %v1960_v15, %v818_v0  ;;  %v2441_v20 = vmul.f32 %v1958_v16, %v817_v1 }
 0x202   :  { %v1141_v4 = vsel %vm892_vm3, %v2403_v2, -inf  ;;  %v943_v5 = vsel %vm892_vm3, %v2405_v3, -inf  ;;  %v1266_v11 = vsel %vm892_vm3, %v2411_v7, -inf  ;;  %v893_v12 = vsel %vm892_vm3, %v2413_v8, -inf }
 0x203   :  { %1142 = vmax.xlane.f32.xlu1 %v1141_v4  ;;  %944 = vmax.xlane.f32.xlu0 %v943_v5  ;;  %v1516_v17 = vsel %vm892_vm3, %v2425_v13, -inf  ;;  %v1391_v18 = vsel %vm892_vm3, %v2427_v14, -inf  ;;  %v1766_v21 = vsel %vm892_vm3, %v2439_v19, -inf  ;;  %v1641_v22 = vsel %vm892_vm3, %v2441_v20, -inf }
 0x207   :  { %1267 = vmax.xlane.f32.xlu1 %v1266_v11  ;;  %894 = vmax.xlane.f32.xlu0 %v893_v12 }
 0x20b   :  { %1517 = vmax.xlane.f32.xlu1 %v1516_v17  ;;  %1392 = vmax.xlane.f32.xlu0 %v1391_v18 }
 0x20f   :  { %1767 = vmax.xlane.f32.xlu1 %v1766_v21  ;;  %1642 = vmax.xlane.f32.xlu0 %v1641_v22 }
 0x290   :  { %v1143_v25 = vpop.xlane.xlu1 %1142  ;;  %v945_v26 = vpop.xlane.xlu0 %944 }
 0x291   :  { %vm1144_vm4 = vcmp.eq.f32.partialorder %v2403_v2, %v1143_v25  ;;  %vm946_vm5 = vcmp.eq.f32.partialorder %v2405_v3, %v945_v26 }
 0x292   :  { %v1145_v27 = vsel %vm1144_vm4, %v2447_v24, 8  ;;  %v947_v28 = vsel %vm946_vm5, %v2447_v24, 8 }
 0x293   :  { %v1146_v29 = vsel %vm892_vm3, %v1145_v27, 2147483647  ;;  %v948_v30 = vsel %vm892_vm3, %v947_v28, 2147483647 }
 0x294   :  { %v1268_v31 = vpop.xlane.xlu1 %1267  ;;  %v895_v32 = vpop.xlane.xlu0 %894  ;;  %v950_v33 = vshra.s32 %v948_v30, 16  ;;  %v1148_v37 = vshra.s32 %v1146_v29, 16  ;;  %v949_v1 = vand.u32 65535, %v948_v30  ;;  %v1147_v10 = vand.u32 65535, %v1146_v29 }
 0x295   :  { %vm1269_vm6 = vcmp.eq.f32.partialorder %v2411_v7, %v1268_v31  ;;  %vm896_vm7 = vcmp.eq.f32.partialorder %v2413_v8, %v895_v32 }
 0x296   :  { %v1270_v34 = vsel %vm1269_vm6, %v2447_v24, 8  ;;  %v897_v35 = vsel %vm896_vm7, %v2447_v24, 8  ;;  %v952_v36 = vcvt.s32.f32 %v950_v33  ;;  %v1150_v46 = vcvt.s32.f32 %v1148_v37 }
 0x297   :  { %v1271_v38 = vsel %vm892_vm3, %v1270_v34, 2147483647  ;;  %v898_v39 = vsel %vm892_vm3, %v897_v35, 2147483647  ;;  %v951_v5 = vcvt.s32.f32 %v949_v1  ;;  %v1149_v17 = vcvt.s32.f32 %v1147_v10 }
 0x298   :  { %v1518_v40 = vpop.xlane.xlu1 %1517  ;;  %953 = vmin.xlane.f32.xlu0 %v952_v36  ;;  %v1393_v41 = vpop.xlane.xlu0 %1392  ;;  %v900_v42 = vshra.s32 %v898_v39, 16  ;;  %v1273_v43 = vshra.s32 %v1271_v38, 16  ;;  %v899_v9 = vand.u32 65535, %v898_v39  ;;  %v1272_v18 = vand.u32 65535, %v1271_v38 }
 0x299   :  { %vm1519_vm8 = vcmp.eq.f32.partialorder %v2425_v13, %v1518_v40  ;;  %vm1394_vm9 = vcmp.eq.f32.partialorder %v2427_v14, %v1393_v41 }
 0x29a   :  { %v1520_v44 = vsel %vm1519_vm8, %v2447_v24, 8  ;;  %v1395_v45 = vsel %vm1394_vm9, %v2447_v24, 8  ;;  %v902_v47 = vcvt.s32.f32 %v900_v42  ;;  %v1275_v53 = vcvt.s32.f32 %v1273_v43 }
 0x29b   :  { %v1521_v48 = vsel %vm892_vm3, %v1520_v44, 2147483647  ;;  %v1396_v49 = vsel %vm892_vm3, %v1395_v45, 2147483647  ;;  %v901_v16 = vcvt.s32.f32 %v899_v9  ;;  %v1274_v27 = vcvt.s32.f32 %v1272_v18 }
 0x29c   :  { %v1768_v50 = vpop.xlane.xlu1 %1767  ;;  %1151 = vmin.xlane.f32.xlu0 %v1150_v46  ;;  %903 = vmin.xlane.f32.xlu1 %v902_v47  ;;  %v1643_v51 = vpop.xlane.xlu0 %1642  ;;  %v1398_v52 = vshra.s32 %v1396_v49, 16  ;;  %v1523_v57 = vshra.s32 %v1521_v48, 16  ;;  %v1397_v21 = vand.u32 65535, %v1396_v49  ;;  %v1522_v29 = vand.u32 65535, %v1521_v48 }
 0x29d   :  { %vm1769_vm10 = vcmp.eq.f32.partialorder %v2439_v19, %v1768_v50  ;;  %vm1644_vm11 = vcmp.eq.f32.partialorder %v2441_v20, %v1643_v51 }
 0x29e   :  { %v1770_v54 = vsel %vm1769_vm10, %v2447_v24, 8  ;;  %v1645_v55 = vsel %vm1644_vm11, %v2447_v24, 8  ;;  %v1400_v56 = vcvt.s32.f32 %v1398_v52  ;;  %v1525_v61 = vcvt.s32.f32 %v1523_v57 }
 0x29f   :  { %v1771_v58 = vsel %vm892_vm3, %v1770_v54, 2147483647  ;;  %v1646_v59 = vsel %vm892_vm3, %v1645_v55, 2147483647  ;;  %v1399_v28 = vcvt.s32.f32 %v1397_v21  ;;  %v1524_v35 = vcvt.s32.f32 %v1522_v29 }
 0x2a0   :  { %1276 = vmin.xlane.f32.xlu1 %v1275_v53  ;;  %1401 = vmin.xlane.f32.xlu0 %v1400_v56  ;;  %v1648_v60 = vshra.s32 %v1646_v59, 16  ;;  %v1773_v63 = vshra.s32 %v1771_v58, 16  ;;  %v1647_v30 = vand.u32 65535, %v1646_v59  ;;  %v1772_v37 = vand.u32 65535, %v1771_v58 }
 0x2a2   :  { %v1650_v62 = vcvt.s32.f32 %v1648_v60  ;;  %v1775_v0 = vcvt.s32.f32 %v1773_v63  ;;  %v1774_v41 = vcvt.s32.f32 %v1772_v37 }
 0x2a4   :  { %1526 = vmin.xlane.f32.xlu1 %v1525_v61  ;;  %1651 = vmin.xlane.f32.xlu0 %v1650_v62 }
 0x2a8   :  { %1776 = vmin.xlane.f32.xlu1 %v1775_v0 }
 0x325   :  { %v954_v4 = vpop.xlane.xlu0 %953 }
 0x326   :  { %vm955_vm12 = vcmp.eq.f32.partialorder %v952_v36, %v954_v4  ;;  %v1649_v36 = vcvt.s32.f32 %v1647_v30  ;;  %v960_v43 = vcvt.f32.s32 %v954_v4 }
 0x327   :  { %v956_v11 = vsel %vm955_vm12, %v951_v5, inf }
 0x328   :  { %957 = vmin.xlane.f32.xlu0 %v956_v11 }
 0x329   :  { %v904_v12 = vpop.xlane.xlu1 %903  ;;  %v1152_v15 = vpop.xlane.xlu0 %1151 }
 0x32a   :  { %vm905_vm13 = vcmp.eq.f32.partialorder %v902_v47, %v904_v12  ;;  %vm1153_vm14 = vcmp.eq.f32.partialorder %v1150_v46, %v1152_v15  ;;  %v910_v44 = vcvt.f32.s32 %v904_v12  ;;  %v961_v46 = vshll.u32 %v960_v43, 16 }
 0x32b   :  { %v906_v22 = vsel %vm905_vm13, %v901_v16, inf  ;;  %v1154_v23 = vsel %vm1153_vm14, %v1149_v17, inf  ;;  %v1158_v47 = vcvt.f32.s32 %v1152_v15 }
 0x32c   :  { %907 = vmin.xlane.f32.xlu1 %v906_v22  ;;  %1155 = vmin.xlane.f32.xlu0 %v1154_v23  ;;  %v911_v50 = vshll.u32 %v910_v44, 16 }
 0x32d   :  { %v1277_v25 = vpop.xlane.xlu1 %1276  ;;  %v1402_v26 = vpop.xlane.xlu0 %1401  ;;  %v1159_v55 = vshll.u32 %v1158_v47, 16 }
 0x32e   :  { %vm1278_vm15 = vcmp.eq.f32.partialorder %v1275_v53, %v1277_v25  ;;  %vm1403_vm1 = vcmp.eq.f32.partialorder %v1400_v56, %v1402_v26  ;;  %v1283_v51 = vcvt.f32.s32 %v1277_v25  ;;  %v1408_v52 = vcvt.f32.s32 %v1402_v26 }
 0x32f   :  { %v1279_v31 = vsel %vm1278_vm15, %v1274_v27, inf  ;;  %v1404_v32 = vsel %vm1403_vm1, %v1399_v28, inf }
 0x330   :  { %1280 = vmin.xlane.f32.xlu1 %v1279_v31  ;;  %1405 = vmin.xlane.f32.xlu0 %v1404_v32  ;;  %v1409_v63 = vshll.u32 %v1408_v52, 16 }
 0x331   :  { %v1527_v33 = vpop.xlane.xlu1 %1526  ;;  %v1652_v34 = vpop.xlane.xlu0 %1651 }
 0x332   :  { %vm1528_vm2 = vcmp.eq.f32.partialorder %v1525_v61, %v1527_v33  ;;  %vm1653_vm4 = vcmp.eq.f32.partialorder %v1650_v62, %v1652_v34  ;;  %v1284_v62 = vshll.u32 %v1283_v51, 16  ;;  %v1658_v1 = vcvt.f32.s32 %v1652_v34 }
 0x333   :  { %v1529_v38 = vsel %vm1528_vm2, %v1524_v35, inf  ;;  %v1654_v39 = vsel %vm1653_vm4, %v1649_v36, inf }
 0x334   :  { %1530 = vmin.xlane.f32.xlu1 %v1529_v38  ;;  %1655 = vmin.xlane.f32.xlu0 %v1654_v39  ;;  %v1659_v22 = vshll.u32 %v1658_v1, 16 }
 0x335   :  { %v1777_v40 = vpop.xlane.xlu1 %1776 }
 0x336   :  { %vm1778_vm5 = vcmp.eq.f32.partialorder %v1775_v0, %v1777_v40  ;;  %v1533_v0 = vcvt.f32.s32 %v1527_v33  ;;  %v1783_v23 = vcvt.f32.s32 %v1777_v40 }
 0x337   :  { %v1779_v42 = vsel %vm1778_vm5, %v1774_v41, inf }
 0x338   :  { %1780 = vmin.xlane.f32.xlu1 %v1779_v42  ;;  %v1534_v21 = vshll.u32 %v1533_v0, 16  ;;  %v1784_v36 = vshll.u32 %v1783_v23, 16 }
 0x3b5   :  { %v958_v45 = vpop.xlane.xlu0 %957 }
 0x3b6   :  { %v959_v48 = vcvt.f32.s32 %v958_v45 }
 0x3b8   :  { %v962_v49 = vadd.s32 %v961_v46, %v959_v48 }
 0x3b9   :  { %v908_v53 = vpop.xlane.xlu1 %907  ;;  %v1156_v54 = vpop.xlane.xlu0 %1155 }
 0x3ba   :  { %v909_v56 = vcvt.f32.s32 %v908_v53  ;;  %v1157_v57 = vcvt.f32.s32 %v1156_v54  ;;  %vm963_vm6 = vcmp.eq.s32.totalorder %v2447_v24, %v962_v49 }
 0x3bb   :  { %v2475_v58 = vsel %vm963_vm6, -inf, %v2405_v3 }
 0x3bc   :  { %v912_v59 = vadd.s32 %v911_v50, %v909_v56  ;;  %v1160_v60 = vadd.s32 %v1159_v55, %v1157_v57  ;;  %v965_v61 = vsel %vm892_vm3, %v2475_v58, -inf }
 0x3bd   :  { %v1281_v4 = vpop.xlane.xlu1 %1280  ;;  %966 = vmax.xlane.f32.xlu0 %v965_v61  ;;  %v1406_v5 = vpop.xlane.xlu0 %1405 }
 0x3be   :  { %v1282_v9 = vcvt.f32.s32 %v1281_v4  ;;  %v1407_v10 = vcvt.f32.s32 %v1406_v5  ;;  %vm913_vm7 = vcmp.eq.s32.totalorder %v2447_v24, %v912_v59  ;;  %vm1161_vm8 = vcmp.eq.s32.totalorder %v2447_v24, %v1160_v60 }
 0x3bf   :  { %v2482_v11 = vsel %vm913_vm7, -inf, %v2413_v8  ;;  %v2485_v12 = vsel %vm1161_vm8, -inf, %v2403_v2 }
 0x3c0   :  { %v1285_v15 = vadd.s32 %v1284_v62, %v1282_v9  ;;  %v1410_v16 = vadd.s32 %v1409_v63, %v1407_v10  ;;  %v915_v17 = vsel %vm892_vm3, %v2482_v11, -inf  ;;  %v1163_v18 = vsel %vm892_vm3, %v2485_v12, -inf }
 0x3c1   :  { %916 = vmax.xlane.f32.xlu1 %v915_v17  ;;  %v1531_v25 = vpop.xlane.xlu1 %1530  ;;  %1164 = vmax.xlane.f32.xlu0 %v1163_v18  ;;  %v1656_v26 = vpop.xlane.xlu0 %1655 }
 0x3c2   :  { %v1532_v27 = vcvt.f32.s32 %v1531_v25  ;;  %v1657_v28 = vcvt.f32.s32 %v1656_v26  ;;  %vm1286_vm9 = vcmp.eq.s32.totalorder %v2447_v24, %v1285_v15  ;;  %vm1411_vm10 = vcmp.eq.s32.totalorder %v2447_v24, %v1410_v16 }
 0x3c3   :  { %v2494_v29 = vsel %vm1286_vm9, -inf, %v2411_v7  ;;  %v2497_v30 = vsel %vm1411_vm10, -inf, %v2427_v14 }
 0x3c4   :  { %v1535_v31 = vadd.s32 %v1534_v21, %v1532_v27  ;;  %v1660_v32 = vadd.s32 %v1659_v22, %v1657_v28  ;;  %v1288_v33 = vsel %vm892_vm3, %v2494_v29, -inf  ;;  %v1413_v34 = vsel %vm892_vm3, %v2497_v30, -inf }
 0x3c5   :  { %1289 = vmax.xlane.f32.xlu1 %v1288_v33  ;;  %v1781_v35 = vpop.xlane.xlu1 %1780  ;;  %1414 = vmax.xlane.f32.xlu0 %v1413_v34 }
 0x3c6   :  { %v1782_v37 = vcvt.f32.s32 %v1781_v35  ;;  %vm1536_vm11 = vcmp.eq.s32.totalorder %v2447_v24, %v1535_v31  ;;  %vm1661_vm12 = vcmp.eq.s32.totalorder %v2447_v24, %v1660_v32 }
 0x3c7   :  { %v2506_v38 = vsel %vm1536_vm11, -inf, %v2425_v13  ;;  %v2509_v39 = vsel %vm1661_vm12, -inf, %v2441_v20 }
 0x3c8   :  { %v1785_v40 = vadd.s32 %v1784_v36, %v1782_v37  ;;  %v1538_v41 = vsel %vm892_vm3, %v2506_v38, -inf  ;;  %v1663_v42 = vsel %vm892_vm3, %v2509_v39, -inf }
 0x3c9   :  { %1539 = vmax.xlane.f32.xlu1 %v1538_v41  ;;  %1664 = vmax.xlane.f32.xlu0 %v1663_v42 }
 0x3ca   :  { %vm1786_vm13 = vcmp.eq.s32.totalorder %v2447_v24, %v1785_v40 }
 0x3cb   :  { %v2517_v43 = vsel %vm1786_vm13, -inf, %v2439_v19 }
 0x3cc   :  { %v1788_v44 = vsel %vm892_vm3, %v2517_v43, -inf }
 0x3cd   :  { %1789 = vmax.xlane.f32.xlu1 %v1788_v44 }
 0x44a   :  { %v967_v45 = vpop.xlane.xlu0 %966 }
 0x44b   :  { %vm968_vm14 = vcmp.eq.f32.partialorder %v2475_v58, %v967_v45 }
 0x44c   :  { %v969_v46 = vsel %vm968_vm14, %v2447_v24, 8 }
 0x44d   :  { %v970_v47 = vsel %vm892_vm3, %v969_v46, 2147483647 }
 0x44e   :  { %v917_v48 = vpop.xlane.xlu1 %916  ;;  %v1165_v49 = vpop.xlane.xlu0 %1164  ;;  %v972_v50 = vshra.s32 %v970_v47, 16  ;;  %v971_v36 = vand.u32 65535, %v970_v47 }
 0x44f   :  { %vm918_vm15 = vcmp.eq.f32.partialorder %v2482_v11, %v917_v48  ;;  %vm1166_vm1 = vcmp.eq.f32.partialorder %v2485_v12, %v1165_v49 }
 0x450   :  { %v919_v51 = vsel %vm918_vm15, %v2447_v24, 8  ;;  %v1167_v52 = vsel %vm1166_vm1, %v2447_v24, 8  ;;  %v974_v53 = vcvt.s32.f32 %v972_v50  ;;  %v973_v40 = vcvt.s32.f32 %v971_v36 }
 0x451   :  { %v920_v54 = vsel %vm892_vm3, %v919_v51, 2147483647  ;;  %v1168_v55 = vsel %vm892_vm3, %v1167_v52, 2147483647 }
 0x452   :  { %v1290_v56 = vpop.xlane.xlu1 %1289  ;;  %975 = vmin.xlane.f32.xlu0 %v974_v53  ;;  %v1415_v57 = vpop.xlane.xlu0 %1414  ;;  %v922_v59 = vshra.s32 %v920_v54, 16  ;;  %v1170_v60 = vshra.s32 %v1168_v55, 16  ;;  %v921_v41 = vand.u32 65535, %v920_v54  ;;  %v1169_v42 = vand.u32 65535, %v1168_v55 }
 0x453   :  { %vm1291_vm2 = vcmp.eq.f32.partialorder %v2494_v29, %v1290_v56  ;;  %vm1416_vm4 = vcmp.eq.f32.partialorder %v2497_v30, %v1415_v57 }
 0x454   :  { %v1292_v61 = vsel %vm1291_vm2, %v2447_v24, 8  ;;  %v1417_v62 = vsel %vm1416_vm4, %v2447_v24, 8  ;;  %v924_v63 = vcvt.s32.f32 %v922_v59  ;;  %v1172_v0 = vcvt.s32.f32 %v1170_v60 }
 0x455   :  { %v1293_v1 = vsel %vm892_vm3, %v1292_v61, 2147483647  ;;  %v1418_v4 = vsel %vm892_vm3, %v1417_v62, 2147483647  ;;  %v923_v48 = vcvt.s32.f32 %v921_v41  ;;  %v1171_v49 = vcvt.s32.f32 %v1169_v42 }
 0x456   :  { %925 = vmin.xlane.f32.xlu1 %v924_v63  ;;  %v1540_v5 = vpop.xlane.xlu1 %1539  ;;  %1173 = vmin.xlane.f32.xlu0 %v1172_v0  ;;  %v1665_v9 = vpop.xlane.xlu0 %1664  ;;  %v1295_v10 = vshra.s32 %v1293_v1, 16  ;;  %v1420_v15 = vshra.s32 %v1418_v4, 16  ;;  %v1294_v50 = vand.u32 65535, %v1293_v1  ;;  %v1419_v51 = vand.u32 65535, %v1418_v4 }
 0x457   :  { %vm1541_vm5 = vcmp.eq.f32.partialorder %v2506_v38, %v1540_v5  ;;  %vm1666_vm6 = vcmp.eq.f32.partialorder %v2509_v39, %v1665_v9 }
 0x458   :  { %v1542_v16 = vsel %vm1541_vm5, %v2447_v24, 8  ;;  %v1667_v17 = vsel %vm1666_vm6, %v2447_v24, 8  ;;  %v1297_v18 = vcvt.s32.f32 %v1295_v10  ;;  %v1422_v21 = vcvt.s32.f32 %v1420_v15 }
 0x459   :  { %v1543_v22 = vsel %vm892_vm3, %v1542_v16, 2147483647  ;;  %v1668_v23 = vsel %vm892_vm3, %v1667_v17, 2147483647  ;;  %v1296_v59 = vcvt.s32.f32 %v1294_v50  ;;  %v1421_v54 = vcvt.s32.f32 %v1419_v51  ;;  %v1961_v17 = vld [vmem:[%s2659_s5 + $0x8] sm:$0xff] }
 0x45a   :  { %1298 = vmin.xlane.f32.xlu1 %v1297_v18  ;;  %v1790_v25 = vpop.xlane.xlu1 %1789  ;;  %1423 = vmin.xlane.f32.xlu0 %v1422_v21  ;;  %v1545_v26 = vshra.s32 %v1543_v22, 16  ;;  %v1670_v27 = vshra.s32 %v1668_v23, 16  ;;  %v1544_v55 = vand.u32 65535, %v1543_v22 }
 0x45b   :  { %vm1791_vm7 = vcmp.eq.f32.partialorder %v2517_v43, %v1790_v25  ;;  %2089 = vmatpush3.msra.mxu0 %v1961_v17 }
 0x45c   :  { %v1792_v28 = vsel %vm1791_vm7, %v2447_v24, 8  ;;  %v1547_v31 = vcvt.s32.f32 %v1545_v26  ;;  %v1672_v32 = vcvt.s32.f32 %v1670_v27  ;;  %2093 = vmatprep.subr.mxu0 %v2220_v6 }
 0x45d   :  { %v1793_v33 = vsel %vm892_vm3, %v1792_v28, 2147483647 }
 0x45e   :  { %1548 = vmin.xlane.f32.xlu1 %v1547_v31  ;;  %1673 = vmin.xlane.f32.xlu0 %v1672_v32  ;;  %v1795_v34 = vshra.s32 %v1793_v33, 16  ;;  %v1794_v4 = vand.u32 65535, %v1793_v33 }
 0x460   :  { %v1797_v35 = vcvt.s32.f32 %v1795_v34  ;;  %v1796_v15 = vcvt.s32.f32 %v1794_v4 }
 0x462   :  { %1798 = vmin.xlane.f32.xlu1 %v1797_v35 }
 0x4df   :  { %v976_v37 = vpop.xlane.xlu0 %975 }
 0x4e0   :  { %vm977_vm8 = vcmp.eq.f32.partialorder %v974_v53, %v976_v37  ;;  %v1669_v53 = vand.u32 65535, %v1668_v23 }
 0x4e1   :  { %v978_v44 = vsel %vm977_vm8, %v973_v40, inf }
 0x4e2   :  { %979 = vmin.xlane.f32.xlu0 %v978_v44 }
 0x4e3   :  { %v926_v45 = vpop.xlane.xlu1 %925  ;;  %v1174_v46 = vpop.xlane.xlu0 %1173 }
 0x4e4   :  { %vm927_vm9 = vcmp.eq.f32.partialorder %v924_v63, %v926_v45  ;;  %vm1175_vm10 = vcmp.eq.f32.partialorder %v1172_v0, %v1174_v46  ;;  %v1546_v63 = vcvt.s32.f32 %v1544_v55  ;;  %v1671_v0 = vcvt.s32.f32 %v1669_v53 }
 0x4e5   :  { %v928_v52 = vsel %vm927_vm9, %v923_v48, inf  ;;  %v1176_v56 = vsel %vm1175_vm10, %v1171_v49, inf  ;;  %v1180_v25 = vcvt.f32.s32 %v1174_v46  ;;  %vm994_vm10 = vcmask 64512  }
 0x4e6   :  { %929 = vmin.xlane.f32.xlu1 %v928_v52  ;;  %1177 = vmin.xlane.f32.xlu0 %v1176_v56 }
 0x4e7   :  { %v1299_v47 = vpop.xlane.xlu1 %1298  ;;  %v1424_v57 = vpop.xlane.xlu0 %1423 }
 0x4e8   :  { %vm1300_vm11 = vcmp.eq.f32.partialorder %v1297_v18, %v1299_v47  ;;  %vm1425_vm12 = vcmp.eq.f32.partialorder %v1422_v21, %v1424_v57  ;;  %v982_v18 = vcvt.f32.s32 %v976_v37  ;;  %v932_v21 = vcvt.f32.s32 %v926_v45 }
 0x4e9   :  { %v1301_v60 = vsel %vm1300_vm11, %v1296_v59, inf  ;;  %v1426_v61 = vsel %vm1425_vm12, %v1421_v54, inf }
 0x4ea   :  { %1302 = vmin.xlane.f32.xlu1 %v1301_v60  ;;  %1427 = vmin.xlane.f32.xlu0 %v1426_v61  ;;  %v983_v23 = vshll.u32 %v982_v18, 16  ;;  %v933_v28 = vshll.u32 %v932_v21, 16 }
 0x4eb   :  { %v1549_v62 = vpop.xlane.xlu1 %1548  ;;  %v1674_v1 = vpop.xlane.xlu0 %1673 }
 0x4ec   :  { %vm1550_vm13 = vcmp.eq.f32.partialorder %v1547_v31, %v1549_v62  ;;  %vm1675_vm14 = vcmp.eq.f32.partialorder %v1672_v32, %v1674_v1  ;;  %v1305_v31 = vcvt.f32.s32 %v1299_v47  ;;  %v1430_v32 = vcvt.f32.s32 %v1424_v57 }
 0x4ed   :  { %v1551_v5 = vsel %vm1550_vm13, %v1546_v63, inf  ;;  %v1676_v9 = vsel %vm1675_vm14, %v1671_v0, inf  ;;  %v1555_v48 = vcvt.f32.s32 %v1549_v62  ;;  %v1680_v49 = vcvt.f32.s32 %v1674_v1 }
 0x4ee   :  { %1552 = vmin.xlane.f32.xlu1 %v1551_v5  ;;  %1677 = vmin.xlane.f32.xlu0 %v1676_v9  ;;  %v1306_v45 = vshll.u32 %v1305_v31, 16  ;;  %v1431_v46 = vshll.u32 %v1430_v32, 16 }
 0x4ef   :  { %v2545_v10 = vpop.xlane.xlu1 %1798  ;;  %v1556_v53 = vshll.u32 %v1555_v48, 16  ;;  %v1681_v60 = vshll.u32 %v1680_v49, 16 }
 0x4f0   :  { %vm1800_vm15 = vcmp.eq.f32.partialorder %v1797_v35, %v2545_v10  ;;  %v1181_v35 = vshll.u32 %v1180_v25, 16  ;;  %v1805_v61 = vcvt.f32.s32 %v2545_v10 }
 0x4f1   :  { %v1801_v16 = vsel %vm1800_vm15, %v1796_v15, inf }
 0x4f2   :  { %1802 = vmin.xlane.f32.xlu1 %v1801_v16  ;;  %v1806_v16 = vshll.u32 %v1805_v61, 16 }
 0x56f   :  { %v980_v22 = vpop.xlane.xlu0 %979 }
 0x570   :  { %v981_v26 = vcvt.f32.s32 %v980_v22 }
 0x572   :  { %v984_v27 = vadd.s32 %v983_v23, %v981_v26 }
 0x573   :  { %v930_v33 = vpop.xlane.xlu1 %929  ;;  %v1178_v34 = vpop.xlane.xlu0 %1177 }
 0x574   :  { %v931_v36 = vcvt.f32.s32 %v930_v33  ;;  %v1179_v40 = vcvt.f32.s32 %v1178_v34  ;;  %vm985_vm1 = vcmp.eq.s32.totalorder %v2447_v24, %v984_v27 }
 0x575   :  { %v986_v41 = vsel %vm985_vm1, -inf, %v2475_v58 }
 0x576   :  { %v934_v42 = vadd.s32 %v933_v28, %v931_v36  ;;  %v1182_v37 = vadd.s32 %v1181_v35, %v1179_v40  ;;  %v987_v44 = vsel %vm892_vm3, %v986_v41, -inf }
 0x577   :  { %v1303_v50 = vpop.xlane.xlu1 %1302  ;;  %988 = vmax.xlane.f32.xlu0 %v987_v44  ;;  %v1428_v51 = vpop.xlane.xlu0 %1427 }
 0x578   :  { %v1304_v52 = vcvt.f32.s32 %v1303_v50  ;;  %v1429_v56 = vcvt.f32.s32 %v1428_v51  ;;  %vm935_vm2 = vcmp.eq.s32.totalorder %v2447_v24, %v934_v42  ;;  %vm1183_vm4 = vcmp.eq.s32.totalorder %v2447_v24, %v1182_v37 }
 0x579   :  { %v936_v47 = vsel %vm935_vm2, -inf, %v2482_v11  ;;  %v1184_v58 = vsel %vm1183_vm4, -inf, %v2485_v12  ;;  %vm1891_vm4 = vcmask 517120  }
 0x57a   :  { %v1307_v57 = vadd.s32 %v1306_v45, %v1304_v52  ;;  %v1432_v59 = vadd.s32 %v1431_v46, %v1429_v56  ;;  %v937_v54 = vsel %vm892_vm3, %v936_v47, -inf  ;;  %v1185_v55 = vsel %vm892_vm3, %v1184_v58, -inf }
 0x57b   :  { %938 = vmax.xlane.f32.xlu1 %v937_v54  ;;  %v1553_v62 = vpop.xlane.xlu1 %1552  ;;  %1186 = vmax.xlane.f32.xlu0 %v1185_v55  ;;  %v1678_v1 = vpop.xlane.xlu0 %1677 }
 0x57c   :  { %v1554_v63 = vcvt.f32.s32 %v1553_v62  ;;  %v1679_v0 = vcvt.f32.s32 %v1678_v1  ;;  %vm1308_vm5 = vcmp.eq.s32.totalorder %v2447_v24, %v1307_v57  ;;  %vm1433_vm6 = vcmp.eq.s32.totalorder %v2447_v24, %v1432_v59 }
 0x57d   :  { %v1309_v11 = vsel %vm1308_vm5, -inf, %v2494_v29  ;;  %v1434_v12 = vsel %vm1433_vm6, -inf, %v2497_v30 }
 0x57e   :  { %v1557_v4 = vadd.s32 %v1556_v53, %v1554_v63  ;;  %v1682_v5 = vadd.s32 %v1681_v60, %v1679_v0  ;;  %v1310_v9 = vsel %vm892_vm3, %v1309_v11, -inf  ;;  %v1435_v10 = vsel %vm892_vm3, %v1434_v12, -inf }
 0x57f   :  { %1311 = vmax.xlane.f32.xlu1 %v1310_v9  ;;  %v1803_v15 = vpop.xlane.xlu1 %1802  ;;  %1436 = vmax.xlane.f32.xlu0 %v1435_v10 }
 0x580   :  { %v1804_v17 = vcvt.f32.s32 %v1803_v15  ;;  %vm1558_vm7 = vcmp.eq.s32.totalorder %v2447_v24, %v1557_v4  ;;  %vm1683_vm8 = vcmp.eq.s32.totalorder %v2447_v24, %v1682_v5 }
 0x581   :  { %v1559_v18 = vsel %vm1558_vm7, -inf, %v2506_v38  ;;  %v1684_v29 = vsel %vm1683_vm8, -inf, %v2509_v39  ;;  %v942_v38 = vld [vmem:[%s2659_s5] sm:$0xff] }
 0x582   :  { %v1807_v30 = vadd.s32 %v1806_v16, %v1804_v17  ;;  %v1560_v21 = vsel %vm892_vm3, %v1559_v18, -inf  ;;  %v1685_v22 = vsel %vm892_vm3, %v1684_v29, -inf }
 0x583   :  { %1561 = vmax.xlane.f32.xlu1 %v1560_v21  ;;  %1686 = vmax.xlane.f32.xlu0 %v1685_v22 }
 0x584   :  { %vm1808_vm9 = vcmp.eq.s32.totalorder %v2447_v24, %v1807_v30 }
 0x585   :  { %v1809_v23 = vsel %vm1808_vm9, -inf, %v2517_v43 }
 0x586   :  { %v1810_v25 = vsel %vm892_vm3, %v1809_v23, -inf }
 0x587   :  { %1811 = vmax.xlane.f32.xlu1 %v1810_v25 }
 0x604   :  { %v989_v26 = vpop.xlane.xlu0 %988 }
 0x605   :  { %vm990_vm11 = vcmp.gt.f32.partialorder %v2405_v3, %v989_v26  ;;  %v1964_v3 = vld [vmem:[%s2659_s5 + $0x10] sm:$0xff] }
 0x606   :  { %v991_v39 = vsel %vm990_vm11, 1.0, %v2220_v6 }
 0x607   :  { %2091 = vmatmul.mubr.msk.f32.vlgmr.msra.gmra.mrb[2].mxu0 %vm994_vm10, %v991_v39 }
 0x608   :  { %2094 = vmatpush3.msra.mxu0 %v942_v38  ;;  %v939_v27 = vpop.xlane.xlu1 %938  ;;  %2095 = vmatprep.mubr.msk.f32.mxu0 %vm2219_vm0, %v2220_v6  ;;  %v1187_v43 = vpop.xlane.xlu0 %1186 }
 0x609   :  { %2098 = vmatprep.subr.mxu0 %v2220_v6  ;;  %vm940_vm3 = vcmp.gt.f32.partialorder %v2413_v8, %v939_v27  ;;  %vm1188_vm12 = vcmp.gt.f32.partialorder %v2403_v2, %v1187_v43  ;;  %v1966_v8 = vld [vmem:[%s2659_s5 + $0x18] sm:$0xff]  ;;  %v1968_v2 = vld [vmem:[%s2659_s5 + $0x20] sm:$0xff] }
 0x60a   :  { %v941_v24 = vsel %vm940_vm3, 1.0, %v2220_v6  ;;  %v1189_v28 = vsel %vm1188_vm12, 1.0, %v2220_v6 }
 0x60c   :  { %v1312_v31 = vpop.xlane.xlu1 %1311  ;;  %v1437_v33 = vpop.xlane.xlu0 %1436 }
 0x60d   :  { %vm1313_vm13 = vcmp.gt.f32.partialorder %v2411_v7, %v1312_v31  ;;  %vm1438_vm14 = vcmp.gt.f32.partialorder %v2427_v14, %v1437_v33  ;;  %v1970_v7 = vld [vmem:[%s2659_s5 + $0x28] sm:$0xff]  ;;  %v1972_v14 = vld [vmem:[%s2659_s5 + $0x30] sm:$0xff] }
 0x60e   :  { %v1314_v32 = vsel %vm1313_vm13, 1.0, %v2220_v6  ;;  %v1439_v34 = vsel %vm1438_vm14, 1.0, %v2220_v6 }
 0x60f   :  { %2096 = vmatmul.mubr.msk.f32.vlgmr.msra.gmra.mrb[2].mxu0 %vm994_vm10, %v941_v24 }
 0x610   :  { %2099 = vmatpush3.msra.mxu0 %v1964_v3  ;;  %2100 = vmatprep.mubr.msk.f32.mxu0 %vm2219_vm0, %v2220_v6  ;;  %v1562_v35 = vpop.xlane.xlu1 %1561  ;;  %v1687_v40 = vpop.xlane.xlu0 %1686 }
 0x611   :  { %2103 = vmatprep.subr.mxu0 %v2220_v6  ;;  %vm1563_vm15 = vcmp.gt.f32.partialorder %v2425_v13, %v1562_v35  ;;  %vm1688_vm1 = vcmp.gt.f32.partialorder %v2441_v20, %v1687_v40  ;;  %v1974_v13 = vld [vmem:[%s2659_s5 + $0x38] sm:$0xff]  ;;  %s2194_s5 = scalar_lea.vmem %s1900_s1, 32 }
 0x612   :  { %v1564_v36 = vsel %vm1563_vm15, 1.0, %v2220_v6  ;;  %v1689_v41 = vsel %vm1688_vm1, 1.0, %v2220_v6  ;;  %p2195_p0 = scmp.ne.s32.totalorder %s1900_s1, %s2194_s5  ;;  %p2200_p2 = scmp.lt.s32.totalorder %s2194_s5, %s2194_s5 }
 0x614   :  { %v1812_v42 = vpop.xlane.xlu1 %1811  ;;  %p2201_p3 = por %p2200_p2, %p2199_p1 }
 0x615   :  { %vm1813_vm2 = vcmp.gt.f32.partialorder %v2439_v19, %v1812_v42 }
 0x616   :  { %v1814_v37 = vsel %vm1813_vm2, 1.0, %v2220_v6  ;;  %p2202_p4 = pnand %p2201_p3, %p2195_p0 }
 0x617   :  { %2101 = vmatmul.mubr.msk.f32.vlgmr.msra.gmra.mrb[2].mxu0 %vm994_vm10, %v1189_v28 }
 0x618   :  { %2104 = vmatpush3.msra.mxu0 %v1966_v8  ;;  %2105 = vmatprep.mubr.msk.f32.mxu0 %vm2219_vm0, %v2220_v6 }
 0x619   :  { %2108 = vmatprep.subr.mxu0 %v2220_v6 }
 0x61f   :  { %2106 = vmatmul.mubr.msk.f32.vlgmr.msra.gmra.mrb[2].mxu0 %vm994_vm10, %v1314_v32 }
 0x620   :  { %2109 = vmatpush3.msra.mxu0 %v1968_v2  ;;  %2110 = vmatprep.mubr.msk.f32.mxu0 %vm2219_vm0, %v2220_v6 }
 0x621   :  { %2113 = vmatprep.subr.mxu0 %v2220_v6 }
 0x627   :  { %2111 = vmatmul.mubr.msk.f32.vlgmr.msra.gmra.mrb[2].mxu0 %vm994_vm10, %v1439_v34 }
 0x628   :  { %2114 = vmatpush3.msra.mxu0 %v1970_v7  ;;  %2115 = vmatprep.mubr.msk.f32.mxu0 %vm2219_vm0, %v2220_v6 }
 0x629   :  { %2118 = vmatprep.subr.mxu0 %v2220_v6 }
 0x62f   :  { %2116 = vmatmul.mubr.msk.f32.vlgmr.msra.gmra.mrb[2].mxu0 %vm994_vm10, %v1564_v36 }
 0x630   :  { %2119 = vmatpush3.msra.mxu0 %v1972_v14  ;;  %2120 = vmatprep.mubr.msk.f32.mxu0 %vm2219_vm0, %v2220_v6 }
 0x631   :  { %2123 = vmatprep.subr.mxu0 %v2220_v6 }
 0x637   :  { %2121 = vmatmul.mubr.msk.f32.vlgmr.msra.gmra.mrb[2].mxu0 %vm994_vm10, %v1689_v41 }
 0x638   :  { %2124 = vmatpush3.msra.mxu0 %v1974_v13  ;;  %2125 = vmatprep.mubr.msk.f32.mxu0 %vm2219_vm0, %v2220_v6 }
 0x63f   :  { %2126 = vmatmul.mubr.msk.f32.vlgmr.msra.gmra.mrb[2].mxu0 %vm994_vm10, %v1814_v37 }
 0x712   :  { %v1886_v20 = vpop.f32.mrb[2].mxu0 }
 0x713   :  { %1892 = vst.msk [vmem:[#allocation2] sm:$0x3] %vm1891_vm4, %v1886_v20  ;;  %v2127_v44 = vpop.f32.mrb[3].mxu0 }
 0x714   :  { %2205 = shalt.err (!%p2202_p4)
}
 0x715   :  { %s2206_s13 = scalar_lea.hbm %s2661_s7, 32 }
 0x716   :  { %p2207_p5 = scmp.ne.s32.totalorder %s2661_s7, %s2206_s13  ;;  %p2210_p6 = scmp.lt.u32.totalorder %s2206_s13, %s2661_s7 }
 0x718   :  { %p2212_p7 = pnand %p2210_p6, %p2207_p5 }
 0x71a   :  { %2215 = shalt.err (!%p2212_p7)
}
 0x71b   :  { %1902 = dma.vmem_to_hbm [thread:$0]  %s1900_s1, 32, %s2661_s7, [#allocation3]  }
 0x71c   :  { %2216 = dma.done.wait [#allocation3], 32  }
 0x71d   :  { %2217 = vsyncadd [#allocation3], 4294967264 }
 0x71e   :  { %1906 = vsyncpa [#allocation3], 1 }

</bundles_post_ra>
